<compile_context>
chip_gen: v7x
topology: tpu7x:2x2x1
jax: 0.10.0
libtpu: 0.0.40
codegen_flags: <defaults>
</compile_context>

<pallas_src>
import jax
import jax.numpy as jnp
from jax import lax
from jax.experimental import pallas as pl
from jax.experimental.pallas import tpu as pltpu

LEAK = 0.01  # nn.LeakyReLU(0.01) — matches the PyTorch spec.


# ----------------------------- Pallas kernels ------------------------------ #

def _lrelu(x):
    return jnp.where(x > 0, x, LEAK * x)


def _conv_block_kernel(p_ref, w_ref, b_ref, o_ref):
    # Fused Conv2d(3x3, pad=1) + bias + LeakyReLU + MaxPool2d(2), one image.
    #   p_ref: (9*Cin, 4*Ho*Wo) pool-grouped im2col columns
    #   w_ref: (Cout, 9*Cin)   b_ref: (Cout, 1)   o_ref: (Cout, Ho*Wo)
    acc = jnp.dot(w_ref[...], p_ref[...], preferred_element_type=jnp.float32)
    acc = _lrelu(acc + b_ref[...])
    n = o_ref.shape[-1]                      # Ho*Wo; lane-aligned block slices
    o_ref[...] = jnp.maximum(
        jnp.maximum(acc[:, 0 * n:1 * n], acc[:, 1 * n:2 * n]),
        jnp.maximum(acc[:, 2 * n:3 * n], acc[:, 3 * n:4 * n]))


def _conv_block_linear_kernel(p_ref, w_ref, b_ref, wl_ref, bl_ref, o_ref):
    # Final block: Conv3 + bias + LeakyReLU + MaxPool2d(2) + Flatten + Linear.
    #   p_ref: (72, 256)   w_ref: (8, 72)   b_ref: (8, 1)
    #   wl_ref: (8, 64, 4) linear weight in (channel, pixel, out) order
    #   bl_ref: (1, 4)     o_ref: (1, 4)
    acc = jnp.dot(w_ref[...], p_ref[...], preferred_element_type=jnp.float32)
    acc = _lrelu(acc + b_ref[...])
    n = wl_ref.shape[1]                      # Ho*Wo = 64
    pooled = jnp.maximum(
        jnp.maximum(acc[:, 0 * n:1 * n], acc[:, 1 * n:2 * n]),
        jnp.maximum(acc[:, 2 * n:3 * n], acc[:, 3 * n:4 * n]))  # (8, 64)
    # Flatten (torch NCHW order == channel-major rows of `pooled`) + Linear,
    # accumulated as 8 tiny (1,64)@(64,4) MXU dots — no in-kernel relayout.
    res = bl_ref[...]
    for c in range(pooled.shape[0]):
        res = res + jnp.dot(pooled[c:c + 1, :], wl_ref[c],
                            preferred_element_type=jnp.float32)
    o_ref[...] = res


# ------------------------------ host wrappers ------------------------------ #

def _pool_grouped_patches(x_chw):
    """x_chw: (B, C, H, W) -> im2col columns (B, 9*C, 4*(H//2)*(W//2)).

    Row order    k = (dy*3 + dx)*C + ci         (matches torch_conv_w_to_mat)
    Column order n = ((py*2 + px)*Ho + h)*Wo + w
    i.e. the four 2x2-pool positions form contiguous lane blocks, so the fused
    kernel pools with lane-aligned block maxima.
    """
    B, C, H, W = x_chw.shape
    Ho, Wo = H // 2, W // 2
    xp = jnp.pad(x_chw, ((0, 0), (0, 0), (1, 1), (1, 1)))
    cols = []
    for dy in range(3):
        for dx in range(3):
            s = xp[:, :, dy:dy + H, dx:dx + W]               # (B, C, H, W)
            s = s.reshape(B, C, Ho, 2, Wo, 2)                # h=2h'+py, w=2w'+px
            s = jnp.transpose(s, (0, 1, 3, 5, 2, 4))         # (B, C, py, px, Ho, Wo)
            cols.append(s.reshape(B, C, 4 * Ho * Wo))
    return jnp.concatenate(cols, axis=1)                     # (B, 9*C, 4*Ho*Wo)


def conv_lrelu_pool(x_chw, w_mat, bias):
    """Fused Conv2d(3x3, pad=1) + LeakyReLU + MaxPool2d(2). x_chw: (B, C, H, W)."""
    B, C, H, W = x_chw.shape
    Ho, Wo = H // 2, W // 2
    Cout, K = w_mat.shape
    N = 4 * Ho * Wo
    patches = _pool_grouped_patches(x_chw)                   # (B, K, N)
    out = pl.pallas_call(
        _conv_block_kernel,
        out_shape=jax.ShapeDtypeStruct((B, Cout, Ho * Wo), jnp.float32),
        grid=(B,),
        in_specs=[
            pl.BlockSpec((None, K, N), lambda b: (b, 0, 0)),
            pl.BlockSpec((Cout, K), lambda b: (0, 0)),
            pl.BlockSpec((Cout, 1), lambda b: (0, 0)),
        ],
        out_specs=pl.BlockSpec((None, Cout, Ho * Wo), lambda b: (b, 0, 0)),
        compiler_params=pltpu.CompilerParams(dimension_semantics=("parallel",)),
    )(patches, w_mat, bias.reshape(Cout, 1))
    return out.reshape(B, Cout, Ho, Wo)


def conv_lrelu_pool_linear(x_chw, w_mat, bias, wl, bl):
    """Final fused block: conv + LeakyReLU + pool + flatten + Linear(512, 4)."""
    B, C, H, W = x_chw.shape
    Ho, Wo = H // 2, W // 2                                  # 8, 8
    Cout, K = w_mat.shape                                    # 8, 72
    N = 4 * Ho * Wo                                          # 256
    patches = _pool_grouped_patches(x_chw)                   # (B, 72, 256)
    out = pl.pallas_call(
        _conv_block_linear_kernel,
        out_shape=jax.ShapeDtypeStruct((B, 1, 4), jnp.float32),
        grid=(B,),
        in_specs=[
            pl.BlockSpec((None, K, N), lambda b: (b, 0, 0)),
            pl.BlockSpec((Cout, K), lambda b: (0, 0)),
            pl.BlockSpec((Cout, 1), lambda b: (0, 0)),
            pl.BlockSpec((Cout, Ho * Wo, 4), lambda b: (0, 0, 0)),
            pl.BlockSpec((1, 4), lambda b: (0, 0)),
        ],
        out_specs=pl.BlockSpec((None, 1, 4), lambda b: (b, 0, 0)),
        compiler_params=pltpu.CompilerParams(dimension_semantics=("parallel",)),
    )(patches, w_mat, bias.reshape(Cout, 1), wl, bl)
    return out.reshape(B, 4)


def torch_conv_w_to_mat(w):
    # torch (Cout, Cin, 3, 3) -> (Cout, 9*Cin), column order (dy, dx, ci),
    # matching the patch row order in _pool_grouped_patches.
    Cout, Cin = w.shape[0], w.shape[1]
    return jnp.transpose(w, (0, 2, 3, 1)).reshape(Cout, 9 * Cin)


def conv_class_forward(x_nchw, params):
    """ConvClass3 inference forward. x_nchw: (B, 1, 64, 64) f32 -> (B, 4)."""
    # TODO(synk): nn.Dropout2d(0.3)/nn.Dropout(0.3) are identity at inference; training-mode dropout not implemented.
    (w1, b1), (w2, b2), (w3, b3), (wf, bf) = params
    x = conv_lrelu_pool(x_nchw, torch_conv_w_to_mat(w1), b1)   # (B, 16, 32, 32)
    x = conv_lrelu_pool(x, torch_conv_w_to_mat(w2), b2)        # (B,  8, 16, 16)
    # Linear weight regrouped to (channel, pixel, out) = torch NCHW flatten order.
    wl = jnp.transpose(wf.reshape(4, 8, 64), (1, 2, 0))        # (8, 64, 4)
    return conv_lrelu_pool_linear(x, torch_conv_w_to_mat(w3), b3,
                                  wl, bf.reshape(1, 4))        # (B, 4)


# --------------------------- pure-JAX reference ---------------------------- #

def reference_forward(x_nchw, params):
    (w1, b1), (w2, b2), (w3, b3), (wf, bf) = params

    def block(x, w, b):
        y = lax.conv_general_dilated(
            x, w, (1, 1), 'SAME',
            dimension_numbers=('NCHW', 'OIHW', 'NCHW'),
            precision=lax.Precision.HIGHEST) + b.reshape(1, -1, 1, 1)
        y = jnp.where(y > 0, y, LEAK * y)
        return lax.reduce_window(y, -jnp.inf, lax.max,
                                 (1, 1, 2, 2), (1, 1, 2, 2), 'VALID')

    x = block(x_nchw, w1, b1)
    x = block(x, w2, b2)
    x = block(x, w3, b3)
    x_flat = x.reshape(x.shape[0], -1)                 # torch NCHW flatten
    return jnp.dot(x_flat, wf.T, precision=lax.Precision.HIGHEST) + bf


# ---------------------------------- main ----------------------------------- #

if __name__ == "__main__":
    key = jax.random.PRNGKey(0)
    ks = jax.random.split(key, 9)

    # Parameters in PyTorch layouts, deterministic init.
    w1 = 0.1 * jax.random.normal(ks[0], (16, 1, 3, 3), jnp.float32)
    b1 = 0.1 * jax.random.normal(ks[1], (16,), jnp.float32)
    w2 = 0.1 * jax.random.normal(ks[2], (8, 16, 3, 3), jnp.float32)
    b2 = 0.1 * jax.random.normal(ks[3], (8,), jnp.float32)
    w3 = 0.1 * jax.random.normal(ks[4], (8, 8, 3, 3), jnp.float32)
    b3 = 0.1 * jax.random.normal(ks[5], (8,), jnp.float32)
    wf = 0.1 * jax.random.normal(ks[6], (4, 512), jnp.float32)
    bf = 0.1 * jax.random.normal(ks[7], (4,), jnp.float32)
    params = ((w1, b1), (w2, b2), (w3, b3), (wf, bf))

    # Input: batch=2, 1 channel, 64x64 (required by Linear(512, 4)).
    x = jax.random.normal(ks[8], (2, 1, 64, 64), jnp.float32)

    fwd = jax.jit(conv_class_forward)
    out = jax.block_until_ready(fwd(x, params))

    ref = jax.block_until_ready(reference_forward(x, params))
    assert out.shape == (2, 4) and out.dtype == jnp.float32
    assert jnp.allclose(out, ref, atol=1e-2, rtol=1e-2), (out, ref)

    print("KERNEL_OK")
</pallas_src>

<mosaic_0001>
module attributes {stable_mosaic.version = 11 : i64} {
  func.func @_conv_block_kernel(%arg0: i32, %arg1: memref<1x9x4096xf32, #tpu.memory_space<vmem>>, %arg2: memref<16x9xf32, #tpu.memory_space<vmem>>, %arg3: memref<16x1xf32, #tpu.memory_space<vmem>>, %arg4: memref<1x16x1024xf32, #tpu.memory_space<vmem>>) attributes {dimension_semantics = [#tpu.dimension_semantics<parallel>], iteration_bounds = array<i64: 2>, scalar_prefetch = 0 : i64, scratch_operands = 0 : i64, tpu.core_type = #tpu.core_type<tc>, window_params = [{transform_indices = @transform_0, window_bounds = array<i64: 1, 9, 4096>}, {pipeline_mode = #tpu.pipeline_mode<synchronous>, transform_indices = @transform_1, window_bounds = array<i64: 16, 9>}, {pipeline_mode = #tpu.pipeline_mode<synchronous>, transform_indices = @transform_2, window_bounds = array<i64: 16, 1>}, {transform_indices = @transform_3, window_bounds = array<i64: 1, 16, 1024>}]} {
    %c0 = arith.constant 0 : index
    %c0_0 = arith.constant 0 : index
    %0 = vector.load %arg2[%c0, %c0_0] : memref<16x9xf32, #tpu.memory_space<vmem>>, vector<16x9xf32>
    %c0_1 = arith.constant 0 : index
    %c0_2 = arith.constant 0 : index
    %c0_3 = arith.constant 0 : index
    %1 = vector.load %arg1[%c0_1, %c0_2, %c0_3] : memref<1x9x4096xf32, #tpu.memory_space<vmem>>, vector<1x9x4096xf32>
    %2 = vector.shape_cast %1 : vector<1x9x4096xf32> to vector<9x4096xf32>
    %cst = arith.constant dense<0.000000e+00> : vector<16x4096xf32>
    %3 = tpu.matmul %0, %2, %cst {dimension_numbers = #tpu.dot_dimension_numbers<[1], [0], [0], [1], [0, 0, 1, 1], [], []>} : vector<16x9xf32>, vector<9x4096xf32>, vector<16x4096xf32> -> vector<16x4096xf32>
    %c0_4 = arith.constant 0 : index
    %c0_5 = arith.constant 0 : index
    %4 = vector.load %arg3[%c0_4, %c0_5] : memref<16x1xf32, #tpu.memory_space<vmem>>, vector<16x1xf32>
    %5 = vector.broadcast %4 : vector<16x1xf32> to vector<16x4096xf32>
    %6 = arith.addf %3, %5 : vector<16x4096xf32>
    %cst_6 = arith.constant 0.000000e+00 : f32
    %7 = vector.broadcast %cst_6 : f32 to vector<16x4096xf32>
    %8 = arith.cmpf ogt, %6, %7 : vector<16x4096xf32>
    %cst_7 = arith.constant 0.00999999977 : f32
    %9 = vector.broadcast %cst_7 : f32 to vector<16x4096xf32>
    %10 = arith.mulf %9, %6 : vector<16x4096xf32>
    %11 = arith.select %8, %6, %10 : vector<16x4096xi1>, vector<16x4096xf32>
    %12 = vector.extract_strided_slice %11 {offsets = [0, 0], sizes = [16, 1024], strides = [1, 1]} : vector<16x4096xf32> to vector<16x1024xf32>
    %13 = vector.extract_strided_slice %11 {offsets = [0, 1024], sizes = [16, 1024], strides = [1, 1]} : vector<16x4096xf32> to vector<16x1024xf32>
    %14 = arith.maximumf %12, %13 : vector<16x1024xf32>
    %15 = vector.extract_strided_slice %11 {offsets = [0, 2048], sizes = [16, 1024], strides = [1, 1]} : vector<16x4096xf32> to vector<16x1024xf32>
    %16 = vector.extract_strided_slice %11 {offsets = [0, 3072], sizes = [16, 1024], strides = [1, 1]} : vector<16x4096xf32> to vector<16x1024xf32>
    %17 = arith.maximumf %15, %16 : vector<16x1024xf32>
    %18 = arith.maximumf %14, %17 : vector<16x1024xf32>
    %c0_8 = arith.constant 0 : index
    %c0_9 = arith.constant 0 : index
    %c0_10 = arith.constant 0 : index
    %19 = vector.load %arg4[%c0_8, %c0_9, %c0_10] : memref<1x16x1024xf32, #tpu.memory_space<vmem>>, vector<1x16x1024xf32>
    %20 = vector.shape_cast %19 : vector<1x16x1024xf32> to vector<16x1024xf32>
    %21 = vector.shape_cast %18 : vector<16x1024xf32> to vector<1x16x1024xf32>
    tpu.vector_store %arg4[%c0_8, %c0_9, %c0_10], %21 {strides = array<i32>} : memref<1x16x1024xf32, #tpu.memory_space<vmem>>, vector<1x16x1024xf32>,
    return
  }
  func.func @transform_0(%arg0: i32) -> (i32, i32, i32) {
    %c0_i32 = arith.constant 0 : i32
    %c0_i32_0 = arith.constant 0 : i32
    %c0_i32_1 = arith.constant 0 : i32
    return %arg0, %c0_i32, %c0_i32_0 : i32, i32, i32
  }
  func.func @transform_1(%arg0: i32) -> (i32, i32) {
    %c0_i32 = arith.constant 0 : i32
    %c0_i32_0 = arith.constant 0 : i32
    %c0_i32_1 = arith.constant 0 : i32
    return %c0_i32, %c0_i32_0 : i32, i32
  }
  func.func @transform_2(%arg0: i32) -> (i32, i32) {
    %c0_i32 = arith.constant 0 : i32
    %c0_i32_0 = arith.constant 0 : i32
    %c0_i32_1 = arith.constant 0 : i32
    return %c0_i32, %c0_i32_0 : i32, i32
  }
  func.func @transform_3(%arg0: i32) -> (i32, i32, i32) {
    %c0_i32 = arith.constant 0 : i32
    %c0_i32_0 = arith.constant 0 : i32
    %c0_i32_1 = arith.constant 0 : i32
    return %arg0, %c0_i32, %c0_i32_0 : i32, i32, i32
  }
}

module attributes {stable_mosaic.version = 11 : i64} {
  func.func @_conv_block_kernel(%arg0: i32, %arg1: memref<1x144x1024xf32, #tpu.memory_space<vmem>>, %arg2: memref<8x144xf32, #tpu.memory_space<vmem>>, %arg3: memref<8x1xf32, #tpu.memory_space<vmem>>, %arg4: memref<1x8x256xf32, #tpu.memory_space<vmem>>) attributes {dimension_semantics = [#tpu.dimension_semantics<parallel>], iteration_bounds = array<i64: 2>, scalar_prefetch = 0 : i64, scratch_operands = 0 : i64, tpu.core_type = #tpu.core_type<tc>, window_params = [{transform_indices = @transform_0, window_bounds = array<i64: 1, 144, 1024>}, {pipeline_mode = #tpu.pipeline_mode<synchronous>, transform_indices = @transform_1, window_bounds = array<i64: 8, 144>}, {pipeline_mode = #tpu.pipeline_mode<synchronous>, transform_indices = @transform_2, window_bounds = array<i64: 8, 1>}, {transform_indices = @transform_3, window_bounds = array<i64: 1, 8, 256>}]} {
    %c0 = arith.constant 0 : index
    %c0_0 = arith.constant 0 : index
    %0 = vector.load %arg2[%c0, %c0_0] : memref<8x144xf32, #tpu.memory_space<vmem>>, vector<8x144xf32>
    %c0_1 = arith.constant 0 : index
    %c0_2 = arith.constant 0 : index
    %c0_3 = arith.constant 0 : index
    %1 = vector.load %arg1[%c0_1, %c0_2, %c0_3] : memref<1x144x1024xf32, #tpu.memory_space<vmem>>, vector<1x144x1024xf32>
    %2 = vector.shape_cast %1 : vector<1x144x1024xf32> to vector<144x1024xf32>
    %cst = arith.constant dense<0.000000e+00> : vector<8x1024xf32>
    %3 = tpu.matmul %0, %2, %cst {dimension_numbers = #tpu.dot_dimension_numbers<[1], [0], [0], [1], [0, 0, 1, 1], [], []>} : vector<8x144xf32>, vector<144x1024xf32>, vector<8x1024xf32> -> vector<8x1024xf32>
    %c0_4 = arith.constant 0 : index
    %c0_5 = arith.constant 0 : index
    %4 = vector.load %arg3[%c0_4, %c0_5] : memref<8x1xf32, #tpu.memory_space<vmem>>, vector<8x1xf32>
    %5 = vector.broadcast %4 : vector<8x1xf32> to vector<8x1024xf32>
    %6 = arith.addf %3, %5 : vector<8x1024xf32>
    %cst_6 = arith.constant 0.000000e+00 : f32
    %7 = vector.broadcast %cst_6 : f32 to vector<8x1024xf32>
    %8 = arith.cmpf ogt, %6, %7 : vector<8x1024xf32>
    %cst_7 = arith.constant 0.00999999977 : f32
    %9 = vector.broadcast %cst_7 : f32 to vector<8x1024xf32>
    %10 = arith.mulf %9, %6 : vector<8x1024xf32>
    %11 = arith.select %8, %6, %10 : vector<8x1024xi1>, vector<8x1024xf32>
    %12 = vector.extract_strided_slice %11 {offsets = [0, 0], sizes = [8, 256], strides = [1, 1]} : vector<8x1024xf32> to vector<8x256xf32>
    %13 = vector.extract_strided_slice %11 {offsets = [0, 256], sizes = [8, 256], strides = [1, 1]} : vector<8x1024xf32> to vector<8x256xf32>
    %14 = arith.maximumf %12, %13 : vector<8x256xf32>
    %15 = vector.extract_strided_slice %11 {offsets = [0, 512], sizes = [8, 256], strides = [1, 1]} : vector<8x1024xf32> to vector<8x256xf32>
    %16 = vector.extract_strided_slice %11 {offsets = [0, 768], sizes = [8, 256], strides = [1, 1]} : vector<8x1024xf32> to vector<8x256xf32>
    %17 = arith.maximumf %15, %16 : vector<8x256xf32>
    %18 = arith.maximumf %14, %17 : vector<8x256xf32>
    %c0_8 = arith.constant 0 : index
    %c0_9 = arith.constant 0 : index
    %c0_10 = arith.constant 0 : index
    %19 = vector.load %arg4[%c0_8, %c0_9, %c0_10] : memref<1x8x256xf32, #tpu.memory_space<vmem>>, vector<1x8x256xf32>
    %20 = vector.shape_cast %19 : vector<1x8x256xf32> to vector<8x256xf32>
    %21 = vector.shape_cast %18 : vector<8x256xf32> to vector<1x8x256xf32>
    tpu.vector_store %arg4[%c0_8, %c0_9, %c0_10], %21 {strides = array<i32>} : memref<1x8x256xf32, #tpu.memory_space<vmem>>, vector<1x8x256xf32>,
    return
  }
  func.func @transform_0(%arg0: i32) -> (i32, i32, i32) {
    %c0_i32 = arith.constant 0 : i32
    %c0_i32_0 = arith.constant 0 : i32
    %c0_i32_1 = arith.constant 0 : i32
    return %arg0, %c0_i32, %c0_i32_0 : i32, i32, i32
  }
  func.func @transform_1(%arg0: i32) -> (i32, i32) {
    %c0_i32 = arith.constant 0 : i32
    %c0_i32_0 = arith.constant 0 : i32
    %c0_i32_1 = arith.constant 0 : i32
    return %c0_i32, %c0_i32_0 : i32, i32
  }
  func.func @transform_2(%arg0: i32) -> (i32, i32) {
    %c0_i32 = arith.constant 0 : i32
    %c0_i32_0 = arith.constant 0 : i32
    %c0_i32_1 = arith.constant 0 : i32
    return %c0_i32, %c0_i32_0 : i32, i32
  }
  func.func @transform_3(%arg0: i32) -> (i32, i32, i32) {
    %c0_i32 = arith.constant 0 : i32
    %c0_i32_0 = arith.constant 0 : i32
    %c0_i32_1 = arith.constant 0 : i32
    return %arg0, %c0_i32, %c0_i32_0 : i32, i32, i32
  }
}

module attributes {stable_mosaic.version = 11 : i64} {
  func.func @_conv_block_linear_kernel(%arg0: i32, %arg1: memref<1x72x256xf32, #tpu.memory_space<vmem>>, %arg2: memref<8x72xf32, #tpu.memory_space<vmem>>, %arg3: memref<8x1xf32, #tpu.memory_space<vmem>>, %arg4: memref<8x64x4xf32, #tpu.memory_space<vmem>>, %arg5: memref<1x4xf32, #tpu.memory_space<vmem>>, %arg6: memref<1x1x4xf32, #tpu.memory_space<vmem>>) attributes {dimension_semantics = [#tpu.dimension_semantics<parallel>], iteration_bounds = array<i64: 2>, scalar_prefetch = 0 : i64, scratch_operands = 0 : i64, tpu.core_type = #tpu.core_type<tc>, window_params = [{transform_indices = @transform_0, window_bounds = array<i64: 1, 72, 256>}, {pipeline_mode = #tpu.pipeline_mode<synchronous>, transform_indices = @transform_1, window_bounds = array<i64: 8, 72>}, {pipeline_mode = #tpu.pipeline_mode<synchronous>, transform_indices = @transform_2, window_bounds = array<i64: 8, 1>}, {pipeline_mode = #tpu.pipeline_mode<synchronous>, transform_indices = @transform_3, window_bounds = array<i64: 8, 64, 4>}, {pipeline_mode = #tpu.pipeline_mode<synchronous>, transform_indices = @transform_4, window_bounds = array<i64: 1, 4>}, {transform_indices = @transform_5, window_bounds = array<i64: 1, 1, 4>}]} {
    %c0 = arith.constant 0 : index
    %c0_0 = arith.constant 0 : index
    %0 = vector.load %arg2[%c0, %c0_0] : memref<8x72xf32, #tpu.memory_space<vmem>>, vector<8x72xf32>
    %c0_1 = arith.constant 0 : index
    %c0_2 = arith.constant 0 : index
    %c0_3 = arith.constant 0 : index
    %1 = vector.load %arg1[%c0_1, %c0_2, %c0_3] : memref<1x72x256xf32, #tpu.memory_space<vmem>>, vector<1x72x256xf32>
    %2 = vector.shape_cast %1 : vector<1x72x256xf32> to vector<72x256xf32>
    %cst = arith.constant dense<0.000000e+00> : vector<8x256xf32>
    %3 = tpu.matmul %0, %2, %cst {dimension_numbers = #tpu.dot_dimension_numbers<[1], [0], [0], [1], [0, 0, 1, 1], [], []>} : vector<8x72xf32>, vector<72x256xf32>, vector<8x256xf32> -> vector<8x256xf32>
    %c0_4 = arith.constant 0 : index
    %c0_5 = arith.constant 0 : index
    %4 = vector.load %arg3[%c0_4, %c0_5] : memref<8x1xf32, #tpu.memory_space<vmem>>, vector<8x1xf32>
    %5 = vector.broadcast %4 : vector<8x1xf32> to vector<8x256xf32>
    %6 = arith.addf %3, %5 : vector<8x256xf32>
    %cst_6 = arith.constant 0.000000e+00 : f32
    %7 = vector.broadcast %cst_6 : f32 to vector<8x256xf32>
    %8 = arith.cmpf ogt, %6, %7 : vector<8x256xf32>
    %cst_7 = arith.constant 0.00999999977 : f32
    %9 = vector.broadcast %cst_7 : f32 to vector<8x256xf32>
    %10 = arith.mulf %9, %6 : vector<8x256xf32>
    %11 = arith.select %8, %6, %10 : vector<8x256xi1>, vector<8x256xf32>
    %12 = vector.extract_strided_slice %11 {offsets = [0, 0], sizes = [8, 64], strides = [1, 1]} : vector<8x256xf32> to vector<8x64xf32>
    %13 = vector.extract_strided_slice %11 {offsets = [0, 64], sizes = [8, 64], strides = [1, 1]} : vector<8x256xf32> to vector<8x64xf32>
    %14 = arith.maximumf %12, %13 : vector<8x64xf32>
    %15 = vector.extract_strided_slice %11 {offsets = [0, 128], sizes = [8, 64], strides = [1, 1]} : vector<8x256xf32> to vector<8x64xf32>
    %16 = vector.extract_strided_slice %11 {offsets = [0, 192], sizes = [8, 64], strides = [1, 1]} : vector<8x256xf32> to vector<8x64xf32>
    %17 = arith.maximumf %15, %16 : vector<8x64xf32>
    %18 = arith.maximumf %14, %17 : vector<8x64xf32>
    %c0_8 = arith.constant 0 : index
    %c0_9 = arith.constant 0 : index
    %19 = vector.load %arg5[%c0_8, %c0_9] : memref<1x4xf32, #tpu.memory_space<vmem>>, vector<1x4xf32>
    %20 = vector.extract_strided_slice %18 {offsets = [0, 0], sizes = [1, 64], strides = [1, 1]} : vector<8x64xf32> to vector<1x64xf32>
    %c0_10 = arith.constant 0 : index
    %c0_11 = arith.constant 0 : index
    %c0_12 = arith.constant 0 : index
    %21 = vector.load %arg4[%c0_10, %c0_11, %c0_12] : memref<8x64x4xf32, #tpu.memory_space<vmem>>, vector<1x64x4xf32>
    %22 = vector.shape_cast %21 : vector<1x64x4xf32> to vector<64x4xf32>
    %cst_13 = arith.constant dense<0.000000e+00> : vector<1x4xf32>
    %23 = tpu.matmul %20, %22, %cst_13 {dimension_numbers = #tpu.dot_dimension_numbers<[1], [0], [0], [1], [0, 0, 1, 1], [], []>} : vector<1x64xf32>, vector<64x4xf32>, vector<1x4xf32> -> vector<1x4xf32>
    %24 = arith.addf %19, %23 : vector<1x4xf32>
    %25 = vector.extract_strided_slice %18 {offsets = [1, 0], sizes = [1, 64], strides = [1, 1]} : vector<8x64xf32> to vector<1x64xf32>
    %c1 = arith.constant 1 : index
    %c0_14 = arith.constant 0 : index
    %c0_15 = arith.constant 0 : index
    %26 = vector.load %arg4[%c1, %c0_14, %c0_15] : memref<8x64x4xf32, #tpu.memory_space<vmem>>, vector<1x64x4xf32>
    %27 = vector.shape_cast %26 : vector<1x64x4xf32> to vector<64x4xf32>
    %cst_16 = arith.constant dense<0.000000e+00> : vector<1x4xf32>
    %28 = tpu.matmul %25, %27, %cst_16 {dimension_numbers = #tpu.dot_dimension_numbers<[1], [0], [0], [1], [0, 0, 1, 1], [], []>} : vector<1x64xf32>, vector<64x4xf32>, vector<1x4xf32> -> vector<1x4xf32>
    %29 = arith.addf %24, %28 : vector<1x4xf32>
    %30 = vector.extract_strided_slice %18 {offsets = [2, 0], sizes = [1, 64], strides = [1, 1]} : vector<8x64xf32> to vector<1x64xf32>
    %c2 = arith.constant 2 : index
    %c0_17 = arith.constant 0 : index
    %c0_18 = arith.constant 0 : index
    %31 = vector.load %arg4[%c2, %c0_17, %c0_18] : memref<8x64x4xf32, #tpu.memory_space<vmem>>, vector<1x64x4xf32>
    %32 = vector.shape_cast %31 : vector<1x64x4xf32> to vector<64x4xf32>
    %cst_19 = arith.constant dense<0.000000e+00> : vector<1x4xf32>
    %33 = tpu.matmul %30, %32, %cst_19 {dimension_numbers = #tpu.dot_dimension_numbers<[1], [0], [0], [1], [0, 0, 1, 1], [], []>} : vector<1x64xf32>, vector<64x4xf32>, vector<1x4xf32> -> vector<1x4xf32>
    %34 = arith.addf %29, %33 : vector<1x4xf32>
    %35 = vector.extract_strided_slice %18 {offsets = [3, 0], sizes = [1, 64], strides = [1, 1]} : vector<8x64xf32> to vector<1x64xf32>
    %c3 = arith.constant 3 : index
    %c0_20 = arith.constant 0 : index
    %c0_21 = arith.constant 0 : index
    %36 = vector.load %arg4[%c3, %c0_20, %c0_21] : memref<8x64x4xf32, #tpu.memory_space<vmem>>, vector<1x64x4xf32>
    %37 = vector.shape_cast %36 : vector<1x64x4xf32> to vector<64x4xf32>
    %cst_22 = arith.constant dense<0.000000e+00> : vector<1x4xf32>
    %38 = tpu.matmul %35, %37, %cst_22 {dimension_numbers = #tpu.dot_dimension_numbers<[1], [0], [0], [1], [0, 0, 1, 1], [], []>} : vector<1x64xf32>, vector<64x4xf32>, vector<1x4xf32> -> vector<1x4xf32>
    %39 = arith.addf %34, %38 : vector<1x4xf32>
    %40 = vector.extract_strided_slice %18 {offsets = [4, 0], sizes = [1, 64], strides = [1, 1]} : vector<8x64xf32> to vector<1x64xf32>
    %c4 = arith.constant 4 : index
    %c0_23 = arith.constant 0 : index
    %c0_24 = arith.constant 0 : index
    %41 = vector.load %arg4[%c4, %c0_23, %c0_24] : memref<8x64x4xf32, #tpu.memory_space<vmem>>, vector<1x64x4xf32>
    %42 = vector.shape_cast %41 : vector<1x64x4xf32> to vector<64x4xf32>
    %cst_25 = arith.constant dense<0.000000e+00> : vector<1x4xf32>
    %43 = tpu.matmul %40, %42, %cst_25 {dimension_numbers = #tpu.dot_dimension_numbers<[1], [0], [0], [1], [0, 0, 1, 1], [], []>} : vector<1x64xf32>, vector<64x4xf32>, vector<1x4xf32> -> vector<1x4xf32>
    %44 = arith.addf %39, %43 : vector<1x4xf32>
    %45 = vector.extract_strided_slice %18 {offsets = [5, 0], sizes = [1, 64], strides = [1, 1]} : vector<8x64xf32> to vector<1x64xf32>
    %c5 = arith.constant 5 : index
    %c0_26 = arith.constant 0 : index
    %c0_27 = arith.constant 0 : index
    %46 = vector.load %arg4[%c5, %c0_26, %c0_27] : memref<8x64x4xf32, #tpu.memory_space<vmem>>, vector<1x64x4xf32>
    %47 = vector.shape_cast %46 : vector<1x64x4xf32> to vector<64x4xf32>
    %cst_28 = arith.constant dense<0.000000e+00> : vector<1x4xf32>
    %48 = tpu.matmul %45, %47, %cst_28 {dimension_numbers = #tpu.dot_dimension_numbers<[1], [0], [0], [1], [0, 0, 1, 1], [], []>} : vector<1x64xf32>, vector<64x4xf32>, vector<1x4xf32> -> vector<1x4xf32>
    %49 = arith.addf %44, %48 : vector<1x4xf32>
    %50 = vector.extract_strided_slice %18 {offsets = [6, 0], sizes = [1, 64], strides = [1, 1]} : vector<8x64xf32> to vector<1x64xf32>
    %c6 = arith.constant 6 : index
    %c0_29 = arith.constant 0 : index
    %c0_30 = arith.constant 0 : index
    %51 = vector.load %arg4[%c6, %c0_29, %c0_30] : memref<8x64x4xf32, #tpu.memory_space<vmem>>, vector<1x64x4xf32>
    %52 = vector.shape_cast %51 : vector<1x64x4xf32> to vector<64x4xf32>
    %cst_31 = arith.constant dense<0.000000e+00> : vector<1x4xf32>
    %53 = tpu.matmul %50, %52, %cst_31 {dimension_numbers = #tpu.dot_dimension_numbers<[1], [0], [0], [1], [0, 0, 1, 1], [], []>} : vector<1x64xf32>, vector<64x4xf32>, vector<1x4xf32> -> vector<1x4xf32>
    %54 = arith.addf %49, %53 : vector<1x4xf32>
    %55 = vector.extract_strided_slice %18 {offsets = [7, 0], sizes = [1, 64], strides = [1, 1]} : vector<8x64xf32> to vector<1x64xf32>
    %c7 = arith.constant 7 : index
    %c0_32 = arith.constant 0 : index
    %c0_33 = arith.constant 0 : index
    %56 = vector.load %arg4[%c7, %c0_32, %c0_33] : memref<8x64x4xf32, #tpu.memory_space<vmem>>, vector<1x64x4xf32>
    %57 = vector.shape_cast %56 : vector<1x64x4xf32> to vector<64x4xf32>
    %cst_34 = arith.constant dense<0.000000e+00> : vector<1x4xf32>
    %58 = tpu.matmul %55, %57, %cst_34 {dimension_numbers = #tpu.dot_dimension_numbers<[1], [0], [0], [1], [0, 0, 1, 1], [], []>} : vector<1x64xf32>, vector<64x4xf32>, vector<1x4xf32> -> vector<1x4xf32>
    %59 = arith.addf %54, %58 : vector<1x4xf32>
    %c0_35 = arith.constant 0 : index
    %c0_36 = arith.constant 0 : index
    %c0_37 = arith.constant 0 : index
    %60 = vector.load %arg6[%c0_35, %c0_36, %c0_37] : memref<1x1x4xf32, #tpu.memory_space<vmem>>, vector<1x1x4xf32>
    %61 = vector.shape_cast %60 : vector<1x1x4xf32> to vector<1x4xf32>
    %62 = vector.shape_cast %59 : vector<1x4xf32> to vector<1x1x4xf32>
    tpu.vector_store %arg6[%c0_35, %c0_36, %c0_37], %62 {strides = array<i32>} : memref<1x1x4xf32, #tpu.memory_space<vmem>>, vector<1x1x4xf32>,
    return
  }
  func.func @transform_0(%arg0: i32) -> (i32, i32, i32) {
    %c0_i32 = arith.constant 0 : i32
    %c0_i32_0 = arith.constant 0 : i32
    %c0_i32_1 = arith.constant 0 : i32
    return %arg0, %c0_i32, %c0_i32_0 : i32, i32, i32
  }
  func.func @transform_1(%arg0: i32) -> (i32, i32) {
    %c0_i32 = arith.constant 0 : i32
    %c0_i32_0 = arith.constant 0 : i32
    %c0_i32_1 = arith.constant 0 : i32
    return %c0_i32, %c0_i32_0 : i32, i32
  }
  func.func @transform_2(%arg0: i32) -> (i32, i32) {
    %c0_i32 = arith.constant 0 : i32
    %c0_i32_0 = arith.constant 0 : i32
    %c0_i32_1 = arith.constant 0 : i32
    return %c0_i32, %c0_i32_0 : i32, i32
  }
  func.func @transform_3(%arg0: i32) -> (i32, i32, i32) {
    %c0_i32 = arith.constant 0 : i32
    %c0_i32_0 = arith.constant 0 : i32
    %c0_i32_1 = arith.constant 0 : i32
    %c0_i32_2 = arith.constant 0 : i32
    return %c0_i32, %c0_i32_0, %c0_i32_1 : i32, i32, i32
  }
  func.func @transform_4(%arg0: i32) -> (i32, i32) {
    %c0_i32 = arith.constant 0 : i32
    %c0_i32_0 = arith.constant 0 : i32
    %c0_i32_1 = arith.constant 0 : i32
    return %c0_i32, %c0_i32_0 : i32, i32
  }
  func.func @transform_5(%arg0: i32) -> (i32, i32, i32) {
    %c0_i32 = arith.constant 0 : i32
    %c0_i32_0 = arith.constant 0 : i32
    %c0_i32_1 = arith.constant 0 : i32
    return %arg0, %c0_i32, %c0_i32_0 : i32, i32, i32
  }
}

</mosaic_0001>

<bundles_post_ra>
// kernel: conv_class_forward.3
= control target key start
LH: loop header
LB: loop body
LE: loop exit
PB: predicated region body
PF: predicated region fallthrough
CT: control target
= control target key end

     0   :  { %s2112_s12 = smov 0   ;;  %s2704_s0 = inlined_call_operand.vmem [shape: f32[2,9,4096], index: 0, kind: input, shape index: {}]   ;;  %s2705_s1 = inlined_call_operand.vmem [shape: f32[16,9], index: 1, kind: input, shape index: {}]   ;;  %s2706_s2 = inlined_call_operand.vmem [shape: f32[16,1], index: 2, kind: input, shape index: {}]   ;;  %s2707_s3 = inlined_call_operand.vmem [shape: f32[2,16,1024], index: 3, kind: output, shape index: {}]  }
   0x1 LB: > { %s1896_s13 = sadd.s32 4294967295, %s2087_s12   ;;  %p1900_p0 = scmp.ge.s32.totalorder %s2087_s12, 1  ;;  %s2087_s12 = sphi %s2112_s12, %s13_s12  }
   0x2   : > { %p137_p1 = scmp.lt.s32.totalorder %s2087_s12, 3 }
   0x4   : > { %p138_p2 = pnand %p1900_p0, %p137_p1 }
   0x6   : > { %141 = sbr.rel (%p138_p2) target bundleno = 321 (0x141), region = 32 }
   0xd   : > { %p161_p3 = scmp.lt.s32.totalorder %s1896_s13, 1  ;;  %v2089_v0 = vmov 0.0   ;;  %v237_v1 = vld [vmem:[%s2706_s2] sm:$0xff]  ;;  %vm256_vm0 = vcmask 1040384   ;;  %v2090_v2 = vmov 0   ;;  %v238_v3 = vld [vmem:[%s2706_s2 + $0x8] sm:$0xff] }
   0xe   : > { %417 = vmatprep.mubr.f32.mxu0 %v2089_v0  ;;  %494 = vmatprep.mubr.f32.mxu1 %v2089_v0  ;;  %vm2091_vm1 = vmmov 1   ;;  %v2151_v16 = vld [vmem:[%s2705_s1] sm:$0xff]  ;;  %vm249_vm3 = vcmask 72704   ;;  %v2186_v36 = vld [vmem:[%s2705_s1 + $0x8] sm:$0xff] }
   0xf   : > { %s2763_s13 = smov (!%p161_p3, %s1896_s13), 1  ;;  %2080 = vset.pattern.permute.xlu0 %v2090_v2  ;;  %vm2136_vm2 = vmpackc.low %vm256_vm0, %vm2091_vm1 }
  0x10   : > { %241 = vperm.xlu0 %2080, %v237_v1   ;;  %s1971_s16 = sshll.u32 %s2763_s13, 9  ;;  %s1972_s26 = sshll.u32 %s2763_s13, 7 }
  0x11   : > { %s2134_s21 = scalar_lea.vmem %s2704_s0, %s1971_s16  ;;  %s2594_s29 = scalar_lea.vmem %s2707_s3, %s1972_s26 }
  0x12   : > { %v174_v5 = vld [vmem:[%s2134_s21 + $0x8] sm:$0xff]  ;;  %v176_v7 = vld [vmem:[%s2134_s21 + $0x18] sm:$0xff]  ;;  %v173_v10 = vld [vmem:[%s2134_s21] sm:$0xff] }
  0x13   : > { %v206_v6 = vld [vmem:[%s2134_s21 + $0x108] sm:$0x1]  ;;  %v208_v9 = vld [vmem:[%s2134_s21 + $0x118] sm:$0x1]  ;;  %v205_v11 = vld [vmem:[%s2134_s21 + $0x100] sm:$0x1] }
  0x14   : > { %v1973_v8 = vpack.c.bf16 %v206_v6, %v174_v5  ;;  %246 = vperm.xlu0 %2080, %v238_v3   ;;  %v1979_v12 = vpack.c.bf16 %v208_v9, %v176_v7  ;;  %v1976_v13 = vpack.c.bf16 %v205_v11, %v173_v10  ;;  %v175_v14 = vld [vmem:[%s2134_s21 + $0x10] sm:$0xff]  ;;  %v178_v17 = vld [vmem:[%s2134_s21 + $0x28] sm:$0xff]  ;;  %v180_v20 = vld [vmem:[%s2134_s21 + $0x38] sm:$0xff] }
  0x15   : > { %v207_v15 = vld [vmem:[%s2134_s21 + $0x110] sm:$0x1]  ;;  %v210_v19 = vld [vmem:[%s2134_s21 + $0x128] sm:$0x1]  ;;  %v212_v21 = vld [vmem:[%s2134_s21 + $0x138] sm:$0x1] }
  0x16   : > { %1975 = vmatprep.subr.msk.bf16.mxu0 %vm2136_vm2, %v1973_v8  ;;  %v1982_v18 = vpack.c.bf16 %v207_v15, %v175_v14  ;;  %1981 = vmatprep.subr.msk.bf16.mxu1 %vm2136_vm2, %v1979_v12  ;;  %v1985_v22 = vpack.c.bf16 %v210_v19, %v178_v17  ;;  %v1991_v23 = vpack.c.bf16 %v212_v21, %v180_v20  ;;  %v177_v24 = vld [vmem:[%s2134_s21 + $0x20] sm:$0xff]  ;;  %v179_v26 = vld [vmem:[%s2134_s21 + $0x30] sm:$0xff]  ;;  %v182_v29 = vld [vmem:[%s2134_s21 + $0x48] sm:$0xff] }
  0x17   : > { %1978 = vmatpush1.bf16.msk.msra.mxu0 %vm2136_vm2, %v1976_v13  ;;  %v209_v25 = vld [vmem:[%s2134_s21 + $0x120] sm:$0x1]  ;;  %v211_v28 = vld [vmem:[%s2134_s21 + $0x130] sm:$0x1]  ;;  %v214_v30 = vld [vmem:[%s2134_s21 + $0x148] sm:$0x1] }
  0x18   : > { %1984 = vmatpush1.bf16.msk.msra.mxu1 %vm2136_vm2, %v1982_v18  ;;  %v1988_v27 = vpack.c.bf16 %v209_v25, %v177_v24  ;;  %1987 = vmatprep.subr.msk.bf16.mxu0 %vm2136_vm2, %v1985_v22  ;;  %v1994_v31 = vpack.c.bf16 %v211_v28, %v179_v26  ;;  %v1997_v32 = vpack.c.bf16 %v214_v30, %v182_v29  ;;  %v184_v33 = vld [vmem:[%s2134_s21 + $0x58] sm:$0xff]  ;;  %v181_v37 = vld [vmem:[%s2134_s21 + $0x40] sm:$0xff]  ;;  %v183_v39 = vld [vmem:[%s2134_s21 + $0x50] sm:$0xff] }
  0x19   : > { %1993 = vmatprep.subr.msk.bf16.mxu1 %vm2136_vm2, %v1991_v23  ;;  %v216_v34 = vld [vmem:[%s2134_s21 + $0x158] sm:$0x1]  ;;  %v213_v38 = vld [vmem:[%s2134_s21 + $0x140] sm:$0x1]  ;;  %v215_v40 = vld [vmem:[%s2134_s21 + $0x150] sm:$0x1] }
  0x1a   : > { %1907 = vmatmul.mubr.msk.f32.vlgmr.msra.gmra.mrb[0].mxu0 %vm249_vm3, %v2151_v16  ;;  %v2003_v35 = vpack.c.bf16 %v216_v34, %v184_v33  ;;  %v186_v41 = vld [vmem:[%s2134_s21 + $0x68] sm:$0xff]  ;;  %v2000_v43 = vpack.c.bf16 %v213_v38, %v181_v37  ;;  %v188_v44 = vld [vmem:[%s2134_s21 + $0x78] sm:$0xff]  ;;  %v2006_v46 = vpack.c.bf16 %v215_v40, %v183_v39  ;;  %v185_v49 = vld [vmem:[%s2134_s21 + $0x60] sm:$0xff] }
  0x1b   : > { %1911 = vmatmul.mubr.msk.f32.vlgmr.msra.gmra.mrb[0].mxu1 %vm249_vm3, %v2151_v16  ;;  %1990 = vmatpush1.bf16.msk.msra.mxu0 %vm2136_vm2, %v1988_v27  ;;  %v218_v42 = vld [vmem:[%s2134_s21 + $0x168] sm:$0x1]  ;;  %v220_v45 = vld [vmem:[%s2134_s21 + $0x178] sm:$0x1]  ;;  %v217_v50 = vld [vmem:[%s2134_s21 + $0x160] sm:$0x1] }
  0x1c   : > { %1996 = vmatpush1.bf16.msk.msra.mxu1 %vm2136_vm2, %v1994_v31  ;;  %423 = vmatprep.mubr.f32.mxu0 %v2089_v0  ;;  %v2009_v47 = vpack.c.bf16 %v218_v42, %v186_v41  ;;  %v2015_v48 = vpack.c.bf16 %v220_v45, %v188_v44  ;;  %v187_v51 = vld [vmem:[%s2134_s21 + $0x70] sm:$0xff]  ;;  %v190_v53 = vld [vmem:[%s2134_s21 + $0x88] sm:$0xff]  ;;  %v2012_v55 = vpack.c.bf16 %v217_v50, %v185_v49  ;;  %v192_v56 = vld [vmem:[%s2134_s21 + $0x98] sm:$0xff] }
  0x1d   : > { %500 = vmatprep.mubr.f32.mxu1 %v2089_v0  ;;  %1999 = vmatprep.subr.msk.bf16.mxu0 %vm2136_vm2, %v1997_v32  ;;  %v219_v52 = vld [vmem:[%s2134_s21 + $0x170] sm:$0x1]  ;;  %v222_v54 = vld [vmem:[%s2134_s21 + $0x188] sm:$0x1]  ;;  %v224_v57 = vld [vmem:[%s2134_s21 + $0x198] sm:$0x1] }
  0x1e   : > { %1908 = vmatmul.mubr.msk.f32.gmra.mrb[2].mxu0 %vm249_vm3, %v2186_v36  ;;  %2005 = vmatprep.subr.msk.bf16.mxu1 %vm2136_vm2, %v2003_v35  ;;  %v2018_v58 = vpack.c.bf16 %v219_v52, %v187_v51  ;;  %v2021_v59 = vpack.c.bf16 %v222_v54, %v190_v53  ;;  %v2027_v60 = vpack.c.bf16 %v224_v57, %v192_v56  ;;  %v189_v61 = vld [vmem:[%s2134_s21 + $0x80] sm:$0xff]  ;;  %v191_v63 = vld [vmem:[%s2134_s21 + $0x90] sm:$0xff]  ;;  %v194_v2 = vld [vmem:[%s2134_s21 + $0xa8] sm:$0xff] }
  0x1f   : > { %1912 = vmatmul.mubr.msk.f32.gmra.mrb[2].mxu1 %vm249_vm3, %v2186_v36  ;;  %571 = vmatprep.mubr.f32.mxu0 %v2089_v0  ;;  %v221_v62 = vld [vmem:[%s2134_s21 + $0x180] sm:$0x1]  ;;  %v223_v1 = vld [vmem:[%s2134_s21 + $0x190] sm:$0x1]  ;;  %v226_v3 = vld [vmem:[%s2134_s21 + $0x1a8] sm:$0x1] }
  0x20   : > { %648 = vmatprep.mubr.f32.mxu1 %v2089_v0  ;;  %v2024_v5 = vpack.c.bf16 %v221_v62, %v189_v61  ;;  %v196_v6 = vld [vmem:[%s2134_s21 + $0xb8] sm:$0xff]  ;;  %v2030_v8 = vpack.c.bf16 %v223_v1, %v191_v63  ;;  %v2033_v9 = vpack.c.bf16 %v226_v3, %v194_v2  ;;  %v193_v11 = vld [vmem:[%s2134_s21 + $0xa0] sm:$0xff]  ;;  %v195_v13 = vld [vmem:[%s2134_s21 + $0xb0] sm:$0xff] }
  0x21   : > { %v228_v7 = vld [vmem:[%s2134_s21 + $0x1b8] sm:$0x1]  ;;  %v225_v12 = vld [vmem:[%s2134_s21 + $0x1a0] sm:$0x1]  ;;  %v227_v14 = vld [vmem:[%s2134_s21 + $0x1b0] sm:$0x1] }
  0x22   : > { %1915 = vmatmul.mubr.msk.f32.vlgmr.msra.gmra.mrb[4].mxu0 %vm249_vm3, %v2151_v16  ;;  %v2039_v10 = vpack.c.bf16 %v228_v7, %v196_v6  ;;  %v198_v15 = vld [vmem:[%s2134_s21 + $0xc8] sm:$0xff]  ;;  %v2036_v18 = vpack.c.bf16 %v225_v12, %v193_v11  ;;  %v200_v19 = vld [vmem:[%s2134_s21 + $0xd8] sm:$0xff]  ;;  %v2042_v21 = vpack.c.bf16 %v227_v14, %v195_v13  ;;  %v197_v24 = vld [vmem:[%s2134_s21 + $0xc0] sm:$0xff] }
  0x23   : > { %1919 = vmatmul.mubr.msk.f32.vlgmr.msra.gmra.mrb[4].mxu1 %vm249_vm3, %v2151_v16  ;;  %2002 = vmatpush1.bf16.msk.msra.mxu0 %vm2136_vm2, %v2000_v43  ;;  %v230_v17 = vld [vmem:[%s2134_s21 + $0x1c8] sm:$0x1]  ;;  %v232_v20 = vld [vmem:[%s2134_s21 + $0x1d8] sm:$0x1]  ;;  %v229_v25 = vld [vmem:[%s2134_s21 + $0x1c0] sm:$0x1] }
  0x24   : > { %2008 = vmatpush1.bf16.msk.msra.mxu1 %vm2136_vm2, %v2006_v46  ;;  %577 = vmatprep.mubr.f32.mxu0 %v2089_v0  ;;  %v2045_v22 = vpack.c.bf16 %v230_v17, %v198_v15  ;;  %v2051_v23 = vpack.c.bf16 %v232_v20, %v200_v19  ;;  %v199_v26 = vld [vmem:[%s2134_s21 + $0xd0] sm:$0xff]  ;;  %v202_v28 = vld [vmem:[%s2134_s21 + $0xe8] sm:$0xff]  ;;  %v2048_v30 = vpack.c.bf16 %v229_v25, %v197_v24  ;;  %v204_v31 = vld [vmem:[%s2134_s21 + $0xf8] sm:$0xff] }
  0x25   : > { %654 = vmatprep.mubr.f32.mxu1 %v2089_v0  ;;  %2011 = vmatprep.subr.msk.bf16.mxu0 %vm2136_vm2, %v2009_v47  ;;  %v231_v27 = vld [vmem:[%s2134_s21 + $0x1d0] sm:$0x1]  ;;  %v234_v29 = vld [vmem:[%s2134_s21 + $0x1e8] sm:$0x1]  ;;  %v236_v32 = vld [vmem:[%s2134_s21 + $0x1f8] sm:$0x1] }
  0x26   : > { %1916 = vmatmul.mubr.msk.f32.gmra.mrb[6].mxu0 %vm249_vm3, %v2186_v36  ;;  %2017 = vmatprep.subr.msk.bf16.mxu1 %vm2136_vm2, %v2015_v48  ;;  %v2054_v33 = vpack.c.bf16 %v231_v27, %v199_v26  ;;  %v2057_v34 = vpack.c.bf16 %v234_v29, %v202_v28  ;;  %v2063_v35 = vpack.c.bf16 %v236_v32, %v204_v31  ;;  %v201_v37 = vld [vmem:[%s2134_s21 + $0xe0] sm:$0xff]  ;;  %v203_v39 = vld [vmem:[%s2134_s21 + $0xf0] sm:$0xff] }
  0x27   : > { %1920 = vmatmul.mubr.msk.f32.gmra.mrb[6].mxu1 %vm249_vm3, %v2186_v36  ;;  %725 = vmatprep.mubr.f32.mxu0 %v2089_v0  ;;  %v233_v38 = vld [vmem:[%s2134_s21 + $0x1e0] sm:$0x1]  ;;  %v235_v40 = vld [vmem:[%s2134_s21 + $0x1f0] sm:$0x1] }
  0x28   : > { %802 = vmatprep.mubr.f32.mxu1 %v2089_v0  ;;  %v2060_v41 = vpack.c.bf16 %v233_v38, %v201_v37  ;;  %v2066_v42 = vpack.c.bf16 %v235_v40, %v203_v39 }
  0x2a   : > { %1923 = vmatmul.mubr.msk.f32.vlgmr.msra.gmra.mrb[8].mxu0 %vm249_vm3, %v2151_v16 }
  0x2b   : > { %1927 = vmatmul.mubr.msk.f32.vlgmr.msra.gmra.mrb[8].mxu1 %vm249_vm3, %v2151_v16  ;;  %2014 = vmatpush1.bf16.msk.msra.mxu0 %vm2136_vm2, %v2012_v55 }
  0x2c   : > { %2020 = vmatpush1.bf16.msk.msra.mxu1 %vm2136_vm2, %v2018_v58  ;;  %731 = vmatprep.mubr.f32.mxu0 %v2089_v0 }
  0x2d   : > { %808 = vmatprep.mubr.f32.mxu1 %v2089_v0  ;;  %2023 = vmatprep.subr.msk.bf16.mxu0 %vm2136_vm2, %v2021_v59 }
  0x2e   : > { %1924 = vmatmul.mubr.msk.f32.gmra.mrb[10].mxu0 %vm249_vm3, %v2186_v36  ;;  %2029 = vmatprep.subr.msk.bf16.mxu1 %vm2136_vm2, %v2027_v60 }
  0x2f   : > { %1928 = vmatmul.mubr.msk.f32.gmra.mrb[10].mxu1 %vm249_vm3, %v2186_v36  ;;  %879 = vmatprep.mubr.f32.mxu0 %v2089_v0 }
  0x30   : > { %956 = vmatprep.mubr.f32.mxu1 %v2089_v0 }
  0x32   : > { %1931 = vmatmul.mubr.msk.f32.vlgmr.msra.gmra.mrb[12].mxu0 %vm249_vm3, %v2151_v16 }
  0x33   : > { %1935 = vmatmul.mubr.msk.f32.vlgmr.msra.gmra.mrb[12].mxu1 %vm249_vm3, %v2151_v16  ;;  %2026 = vmatpush1.bf16.msk.msra.mxu0 %vm2136_vm2, %v2024_v5 }
  0x34   : > { %2032 = vmatpush1.bf16.msk.msra.mxu1 %vm2136_vm2, %v2030_v8  ;;  %885 = vmatprep.mubr.f32.mxu0 %v2089_v0 }
  0x35   : > { %962 = vmatprep.mubr.f32.mxu1 %v2089_v0  ;;  %2035 = vmatprep.subr.msk.bf16.mxu0 %vm2136_vm2, %v2033_v9 }
  0x36   : > { %1932 = vmatmul.mubr.msk.f32.gmra.mrb[14].mxu0 %vm249_vm3, %v2186_v36  ;;  %2041 = vmatprep.subr.msk.bf16.mxu1 %vm2136_vm2, %v2039_v10 }
  0x37   : > { %1936 = vmatmul.mubr.msk.f32.gmra.mrb[14].mxu1 %vm249_vm3, %v2186_v36  ;;  %1033 = vmatprep.mubr.f32.mxu0 %v2089_v0 }
  0x38   : > { %1110 = vmatprep.mubr.f32.mxu1 %v2089_v0 }
  0x3a   : > { %1939 = vmatmul.mubr.msk.f32.vlgmr.msra.gmra.mrb[16].mxu0 %vm249_vm3, %v2151_v16 }
  0x3b   : > { %1943 = vmatmul.mubr.msk.f32.vlgmr.msra.gmra.mrb[16].mxu1 %vm249_vm3, %v2151_v16  ;;  %2038 = vmatpush1.bf16.msk.msra.mxu0 %vm2136_vm2, %v2036_v18 }
  0x3c   : > { %2044 = vmatpush1.bf16.msk.msra.mxu1 %vm2136_vm2, %v2042_v21  ;;  %1039 = vmatprep.mubr.f32.mxu0 %v2089_v0 }
  0x3d   : > { %1116 = vmatprep.mubr.f32.mxu1 %v2089_v0  ;;  %2047 = vmatprep.subr.msk.bf16.mxu0 %vm2136_vm2, %v2045_v22 }
  0x3e   : > { %1940 = vmatmul.mubr.msk.f32.gmra.mrb[18].mxu0 %vm249_vm3, %v2186_v36  ;;  %2053 = vmatprep.subr.msk.bf16.mxu1 %vm2136_vm2, %v2051_v23 }
  0x3f   : > { %1944 = vmatmul.mubr.msk.f32.gmra.mrb[18].mxu1 %vm249_vm3, %v2186_v36  ;;  %1187 = vmatprep.mubr.f32.mxu0 %v2089_v0 }
  0x40   : > { %1264 = vmatprep.mubr.f32.mxu1 %v2089_v0 }
  0x42   : > { %1947 = vmatmul.mubr.msk.f32.vlgmr.msra.gmra.mrb[20].mxu0 %vm249_vm3, %v2151_v16 }
  0x43   : > { %1951 = vmatmul.mubr.msk.f32.vlgmr.msra.gmra.mrb[20].mxu1 %vm249_vm3, %v2151_v16  ;;  %2050 = vmatpush1.bf16.msk.msra.mxu0 %vm2136_vm2, %v2048_v30 }
  0x44   : > { %2056 = vmatpush1.bf16.msk.msra.mxu1 %vm2136_vm2, %v2054_v33  ;;  %1193 = vmatprep.mubr.f32.mxu0 %v2089_v0 }
  0x45   : > { %1270 = vmatprep.mubr.f32.mxu1 %v2089_v0  ;;  %2059 = vmatprep.subr.msk.bf16.mxu0 %vm2136_vm2, %v2057_v34 }
  0x46   : > { %1948 = vmatmul.mubr.msk.f32.gmra.mrb[22].mxu0 %vm249_vm3, %v2186_v36  ;;  %2065 = vmatprep.subr.msk.bf16.mxu1 %vm2136_vm2, %v2063_v35 }
  0x47   : > { %1952 = vmatmul.mubr.msk.f32.gmra.mrb[22].mxu1 %vm249_vm3, %v2186_v36  ;;  %1341 = vmatprep.mubr.f32.mxu0 %v2089_v0 }
  0x48   : > { %1418 = vmatprep.mubr.f32.mxu1 %v2089_v0 }
  0x4a   : > { %1955 = vmatmul.mubr.msk.f32.vlgmr.msra.gmra.mrb[24].mxu0 %vm249_vm3, %v2151_v16 }
  0x4b   : > { %1959 = vmatmul.mubr.msk.f32.vlgmr.msra.gmra.mrb[24].mxu1 %vm249_vm3, %v2151_v16  ;;  %2062 = vmatpush1.bf16.msk.msra.mxu0 %vm2136_vm2, %v2060_v41 }
  0x4c   : > { %2068 = vmatpush1.bf16.msk.msra.mxu1 %vm2136_vm2, %v2066_v42  ;;  %1347 = vmatprep.mubr.f32.mxu0 %v2089_v0 }
  0x4d   : > { %1424 = vmatprep.mubr.f32.mxu1 %v2089_v0 }
  0x4e   : > { %1956 = vmatmul.mubr.msk.f32.gmra.mrb[26].mxu0 %vm249_vm3, %v2186_v36 }
  0x4f   : > { %1960 = vmatmul.mubr.msk.f32.gmra.mrb[26].mxu1 %vm249_vm3, %v2186_v36  ;;  %1495 = vmatprep.mubr.f32.mxu0 %v2089_v0 }
  0x50   : > { %1572 = vmatprep.mubr.f32.mxu1 %v2089_v0 }
  0x52   : > { %1963 = vmatmul.mubr.msk.f32.vlgmr.msra.gmra.mrb[28].mxu0 %vm249_vm3, %v2151_v16 }
  0x53   : > { %1967 = vmatmul.mubr.msk.f32.vlgmr.msra.gmra.mrb[28].mxu1 %vm249_vm3, %v2151_v16  ;;  %1501 = vmatprep.mubr.f32.mxu0 %v2089_v0 }
  0x54   : > { %1578 = vmatprep.mubr.f32.mxu1 %v2089_v0 }
  0x56   : > { %1964 = vmatmul.mubr.msk.f32.gmra.mrb[30].mxu0 %vm249_vm3, %v2186_v36 }
  0x57   : > { %1968 = vmatmul.mubr.msk.f32.gmra.mrb[30].mxu1 %vm249_vm3, %v2186_v36 }
  0x8f   : > { %v2372_v4 = vpop.permute.xlu0 %241 }
  0x93   : > { %v2377_v49 = vpop.permute.xlu0 %246 }
  0xed   : > { %v419_v43 = vpop.f32.mrb[0].mxu0 }
  0xee   : > { %v420_v44 = vadd.f32 %v419_v43, %v2372_v4  ;;  %v496_v45 = vpop.f32.mrb[0].mxu1  ;;  %v421_v46 = vpop.f32.mrb[1].mxu0 }
  0xef   : > { %v497_v47 = vadd.f32 %v496_v45, %v2372_v4  ;;  %v422_v16 = vadd.f32 %v421_v46, %v2372_v4  ;;  %v498_v48 = vpop.f32.mrb[1].mxu1 }
  0xf0   : > { %v1649_v0 = vmul.f32 0.01, %v420_v44  ;;  %v499_v50 = vadd.f32 %v498_v48, %v2372_v4  ;;  %vm1585_vm4 = vcmp.gt.f32.partialorder %v420_v44, 0.0 }
  0xf1   : > { %v425_v51 = vpop.f32.mrb[2].mxu0  ;;  %v1651_v52 = vmul.f32 0.01, %v497_v47  ;;  %v1650_v53 = vmul.f32 0.01, %v422_v16  ;;  %vm1587_vm5 = vcmp.gt.f32.partialorder %v497_v47, 0.0 }
  0xf2   : > { %v502_v36 = vpop.f32.mrb[2].mxu1  ;;  %v426_v54 = vadd.f32 %v425_v51, %v2377_v49  ;;  %v427_v56 = vpop.f32.mrb[3].mxu0  ;;  %vm1586_vm6 = vcmp.gt.f32.partialorder %v422_v16, 0.0  ;;  %v2384_v60 = vsel %vm1585_vm4, %v420_v44, %v1649_v0  ;;  %v1652_v61 = vmul.f32 0.01, %v499_v50 }
  0xf3   : > { %v503_v55 = vadd.f32 %v502_v36, %v2377_v49  ;;  %v504_v57 = vpop.f32.mrb[3].mxu1  ;;  %v428_v58 = vadd.f32 %v427_v56, %v2377_v49  ;;  %vm1588_vm7 = vcmp.gt.f32.partialorder %v499_v50, 0.0  ;;  %v2386_v1 = vsel %vm1587_vm5, %v497_v47, %v1651_v52 }
  0xf4   : > { %v505_v59 = vadd.f32 %v504_v57, %v2377_v49  ;;  %v1681_v62 = vmul.f32 0.01, %v426_v54  ;;  %vm1617_vm8 = vcmp.gt.f32.partialorder %v426_v54, 0.0  ;;  %v2388_v2 = vsel %vm1586_vm6, %v422_v16, %v1650_v53 }
  0xf5   : > { %vm1619_vm9 = vcmp.gt.f32.partialorder %v503_v55, 0.0  ;;  %v1683_v63 = vmul.f32 0.01, %v503_v55  ;;  %v1682_v3 = vmul.f32 0.01, %v428_v58  ;;  %v573_v6 = vpop.f32.mrb[4].mxu0  ;;  %v2393_v12 = vsel %vm1588_vm7, %v499_v50, %v1652_v61 }
  0xf6   : > { %v1684_v5 = vmul.f32 0.01, %v505_v59  ;;  %v650_v7 = vpop.f32.mrb[4].mxu1  ;;  %vm1618_vm10 = vcmp.gt.f32.partialorder %v428_v58, 0.0  ;;  %vm1620_vm11 = vcmp.gt.f32.partialorder %v505_v59, 0.0  ;;  %v574_v8 = vadd.f32 %v573_v6, %v2372_v4  ;;  %v575_v10 = vpop.f32.mrb[5].mxu0 }
  0xf7   : > { %v651_v9 = vadd.f32 %v650_v7, %v2372_v4  ;;  %v652_v11 = vpop.f32.mrb[5].mxu1  ;;  %v2396_v13 = vsel %vm1617_vm8, %v426_v54, %v1681_v62  ;;  %v576_v14 = vadd.f32 %v575_v10, %v2372_v4  ;;  %v2401_v20 = vsel %vm1619_vm9, %v503_v55, %v1683_v63 }
  0xf8   : > { %v653_v15 = vadd.f32 %v652_v11, %v2372_v4  ;;  %vm1589_vm12 = vcmp.gt.f32.partialorder %v574_v8, 0.0  ;;  %v1653_v18 = vmul.f32 0.01, %v574_v8  ;;  %v2404_v21 = vsel %vm1618_vm10, %v428_v58, %v1682_v3 }
  0xf9   : > { %v579_v17 = vpop.f32.mrb[6].mxu0  ;;  %vm1591_vm13 = vcmp.gt.f32.partialorder %v651_v9, 0.0  ;;  %v1655_v19 = vmul.f32 0.01, %v651_v9  ;;  %v2407_v22 = vsel %vm1620_vm11, %v505_v59, %v1684_v5  ;;  %v1654_v23 = vmul.f32 0.01, %v576_v14 }
  0xfa   : > { %vm1590_vm14 = vcmp.gt.f32.partialorder %v576_v14, 0.0  ;;  %vm1592_vm15 = vcmp.gt.f32.partialorder %v653_v15, 0.0  ;;  %v1656_v24 = vmul.f32 0.01, %v653_v15  ;;  %v580_v25 = vadd.f32 %v579_v17, %v2377_v49  ;;  %v656_v26 = vpop.f32.mrb[6].mxu1  ;;  %v581_v27 = vpop.f32.mrb[7].mxu0 }
  0xfb   : > { %v2410_v28 = vsel %vm1589_vm12, %v574_v8, %v1653_v18  ;;  %v2412_v29 = vsel %vm1591_vm13, %v651_v9, %v1655_v19  ;;  %v657_v30 = vadd.f32 %v656_v26, %v2377_v49  ;;  %v582_v31 = vadd.f32 %v581_v27, %v2377_v49  ;;  %v658_v32 = vpop.f32.mrb[7].mxu1 }
  0xfc   : > { %vm1621_vm0 = vcmp.gt.f32.partialorder %v580_v25, 0.0  ;;  %v1685_v34 = vmul.f32 0.01, %v580_v25  ;;  %v2417_v35 = vadd.f32 %v658_v32, %v2377_v49  ;;  %v2421_v42 = vsel %vm1590_vm14, %v576_v14, %v1654_v23 }
  0xfd   : > { %v727_v33 = vpop.f32.mrb[8].mxu0  ;;  %vm1623_vm1 = vcmp.gt.f32.partialorder %v657_v30, 0.0  ;;  %v1687_v40 = vmul.f32 0.01, %v657_v30  ;;  %vm1622_vm2 = vcmp.gt.f32.partialorder %v582_v31, 0.0  ;;  %v2424_v43 = vsel %vm1592_vm15, %v653_v15, %v1656_v24 }
  0xfe   : > { %v728_v37 = vadd.f32 %v727_v33, %v2372_v4  ;;  %v804_v38 = vpop.f32.mrb[8].mxu1  ;;  %v729_v39 = vpop.f32.mrb[9].mxu0  ;;  %v1686_v41 = vmul.f32 0.01, %v582_v31  ;;  %2720 = vst [vmem:[#allocation2_spill] sm:$0xff] %v2424_v43  ;;  %v2426_v44 = vsel %vm1621_vm0, %v580_v25, %v1685_v34  ;;  %vm1624_vm9 = vcmp.gt.f32.partialorder %v2417_v35, 0.0 }
  0xff   : > { %2721 = vst [vmem:[#allocation3_spill] sm:$0xff] %v2426_v44  ;;  %v806_v45 = vpop.f32.mrb[9].mxu1  ;;  %v2428_v46 = vsel %vm1623_vm1, %v657_v30, %v1687_v40  ;;  %v2431_v47 = vmul.f32 0.01, %v2417_v35  ;;  %v805_v48 = vadd.f32 %v804_v38, %v2372_v4  ;;  %v730_v51 = vadd.f32 %v729_v39, %v2372_v4 }
 0x100   : > { %vm1593_vm3 = vcmp.gt.f32.partialorder %v728_v37, 0.0  ;;  %2722 = vst [vmem:[#allocation4_spill] sm:$0xff] %v2428_v46  ;;  %v1657_v16 = vmul.f32 0.01, %v728_v37  ;;  %v2434_v50 = vsel %vm1622_vm2, %v582_v31, %v1686_v41  ;;  %v807_v36 = vadd.f32 %v806_v45, %v2372_v4 }
 0x101   : > { %v733_v0 = vpop.f32.mrb[10].mxu0  ;;  %2723 = vst [vmem:[#allocation5_spill] sm:$0xff] %v2434_v50  ;;  %vm1595_vm4 = vcmp.gt.f32.partialorder %v805_v48, 0.0  ;;  %v1659_v56 = vmul.f32 0.01, %v805_v48  ;;  %vm1594_vm5 = vcmp.gt.f32.partialorder %v730_v51, 0.0 }
 0x102   : > { %v734_v52 = vadd.f32 %v733_v0, %v2377_v49  ;;  %v810_v53 = vpop.f32.mrb[10].mxu1  ;;  %v735_v54 = vpop.f32.mrb[11].mxu0  ;;  %v2439_v55 = vsel %vm1593_vm3, %v728_v37, %v1657_v16  ;;  %v1658_v61 = vmul.f32 0.01, %v730_v51  ;;  %vm1596_vm6 = vcmp.gt.f32.partialorder %v807_v36, 0.0 }
 0x103   : > { %v811_v57 = vadd.f32 %v810_v53, %v2377_v49  ;;  %v812_v58 = vpop.f32.mrb[11].mxu1  ;;  %v2444_v62 = vsel %vm1595_vm4, %v805_v48, %v1659_v56  ;;  %v1660_v63 = vmul.f32 0.01, %v807_v36  ;;  %v736_v17 = vadd.f32 %v735_v54, %v2377_v49 }
 0x104   : > { %vm1625_vm7 = vcmp.gt.f32.partialorder %v734_v52, 0.0  ;;  %v1689_v3 = vmul.f32 0.01, %v734_v52  ;;  %v2448_v7 = vsel %vm1594_vm5, %v730_v51, %v1658_v61  ;;  %v813_v25 = vadd.f32 %v812_v58, %v2377_v49 }
 0x105   : > { %v881_v5 = vpop.f32.mrb[12].mxu0  ;;  %vm1627_vm8 = vcmp.gt.f32.partialorder %v811_v57, 0.0  ;;  %v1691_v8 = vmul.f32 0.01, %v811_v57  ;;  %v2452_v14 = vsel %vm1596_vm6, %v807_v36, %v1660_v63  ;;  %vm1626_vm10 = vcmp.gt.f32.partialorder %v736_v17, 0.0 }
 0x106   : > { %v958_v9 = vpop.f32.mrb[12].mxu1  ;;  %v883_v10 = vpop.f32.mrb[13].mxu0  ;;  %v2454_v15 = vsel %vm1625_vm7, %v734_v52, %v1689_v3  ;;  %v1690_v27 = vmul.f32 0.01, %v736_v17  ;;  %v882_v30 = vadd.f32 %v881_v5, %v2372_v4  ;;  %vm1628_vm11 = vcmp.gt.f32.partialorder %v813_v25, 0.0 }
 0x107   : > { %v960_v18 = vpop.f32.mrb[13].mxu1  ;;  %v2461_v24 = vsel %vm1627_vm8, %v811_v57, %v1691_v8  ;;  %v1692_v32 = vmul.f32 0.01, %v813_v25  ;;  %v959_v33 = vadd.f32 %v958_v9, %v2372_v4  ;;  %v884_v34 = vadd.f32 %v883_v10, %v2372_v4 }
 0x108   : > { %v2470_v39 = vsel %vm1626_vm10, %v736_v17, %v1690_v27  ;;  %vm1597_vm12 = vcmp.gt.f32.partialorder %v882_v30, 0.0  ;;  %v1661_v40 = vmul.f32 0.01, %v882_v30  ;;  %v961_v41 = vadd.f32 %v960_v18, %v2372_v4 }
 0x109   : > { %v887_v31 = vpop.f32.mrb[14].mxu0  ;;  %v2475_v48 = vsel %vm1628_vm11, %v813_v25, %v1692_v32  ;;  %vm1599_vm13 = vcmp.gt.f32.partialorder %v959_v33, 0.0  ;;  %v1663_v0 = vmul.f32 0.01, %v959_v33  ;;  %vm1598_vm14 = vcmp.gt.f32.partialorder %v884_v34, 0.0 }
 0x10a   : > { %v964_v37 = vpop.f32.mrb[14].mxu1  ;;  %v889_v38 = vpop.f32.mrb[15].mxu0  ;;  %v2479_v36 = vsel %vm1597_vm12, %v882_v30, %v1661_v40  ;;  %v1662_v52 = vmul.f32 0.01, %v884_v34  ;;  %vm1600_vm15 = vcmp.gt.f32.partialorder %v961_v41, 0.0  ;;  %v888_v5 = vadd.f32 %v887_v31, %v2377_v49 }
 0x10b   : > { %v966_v45 = vpop.f32.mrb[15].mxu1  ;;  %v2483_v56 = vsel %vm1599_vm13, %v959_v33, %v1663_v0  ;;  %v1664_v57 = vmul.f32 0.01, %v961_v41  ;;  %v965_v8 = vadd.f32 %v964_v37, %v2377_v49  ;;  %v890_v18 = vadd.f32 %v889_v38, %v2377_v49 }
 0x10c   : > { %v2487_v3 = vsel %vm1598_vm14, %v884_v34, %v1662_v52  ;;  %v967_v25 = vadd.f32 %v966_v45, %v2377_v49  ;;  %vm1629_vm0 = vcmp.gt.f32.partialorder %v888_v5, 0.0  ;;  %v1693_v30 = vmul.f32 0.01, %v888_v5 }
 0x10d   : > { %v1035_v53 = vpop.f32.mrb[16].mxu0  ;;  %v2493_v17 = vsel %vm1600_vm15, %v961_v41, %v1664_v57  ;;  %vm1631_vm1 = vcmp.gt.f32.partialorder %v965_v8, 0.0  ;;  %v1695_v31 = vmul.f32 0.01, %v965_v8  ;;  %vm1630_vm2 = vcmp.gt.f32.partialorder %v890_v18, 0.0 }
 0x10e   : > { %v1112_v58 = vpop.f32.mrb[16].mxu1  ;;  %v1037_v61 = vpop.f32.mrb[17].mxu0  ;;  %2724 = vst [vmem:[#allocation6_spill] sm:$0xff] %v2493_v17  ;;  %v1694_v33 = vmul.f32 0.01, %v890_v18  ;;  %vm1632_vm3 = vcmp.gt.f32.partialorder %v967_v25, 0.0  ;;  %v2499_v34 = vsel %vm1629_vm0, %v888_v5, %v1693_v30  ;;  %v1036_v40 = vadd.f32 %v1035_v53, %v2372_v4 }
 0x10f   : > { %v1114_v9 = vpop.f32.mrb[17].mxu1  ;;  %2725 = vst [vmem:[#allocation7_spill] sm:$0xff] %v2499_v34  ;;  %v1696_v37 = vmul.f32 0.01, %v967_v25  ;;  %v1113_v38 = vadd.f32 %v1112_v58, %v2372_v4  ;;  %v2507_v0 = vsel %vm1624_vm9, %v2417_v35, %v2431_v47  ;;  %v2511_v57 = vsel %vm1631_vm1, %v965_v8, %v1695_v31 }
 0x110   : > { %2726 = vst [vmem:[#allocation8_spill] sm:$0xff] %v2507_v0  ;;  %2727 = vst [vmem:[#allocation9_spill] sm:$0xff] %v2511_v57  ;;  %v2513_v5 = vsel %vm1630_vm2, %v890_v18, %v1694_v33  ;;  %v1038_v10 = vadd.f32 %v1037_v61, %v2372_v4  ;;  %v1665_v52 = vmul.f32 0.01, %v1036_v40  ;;  %vm1601_vm4 = vcmp.gt.f32.partialorder %v1036_v40, 0.0 }
 0x111   : > { %v1041_v32 = vpop.f32.mrb[18].mxu0  ;;  %2728 = vst [vmem:[#allocation10_spill] sm:$0xff] %v2513_v5  ;;  %v2519_v27 = vsel %vm1632_vm3, %v967_v25, %v1696_v37  ;;  %v1667_v8 = vmul.f32 0.01, %v1113_v38  ;;  %vm1603_vm5 = vcmp.gt.f32.partialorder %v1113_v38, 0.0  ;;  %v1115_v18 = vadd.f32 %v1114_v9, %v2372_v4 }
 0x112   : > { %v1118_v41 = vpop.f32.mrb[18].mxu1  ;;  %v1043_v45 = vpop.f32.mrb[19].mxu0  ;;  %2729 = vst [vmem:[#allocation11_spill] sm:$0xff] %v2519_v27  ;;  %v1042_v33 = vadd.f32 %v1041_v32, %v2377_v49  ;;  %v1666_v37 = vmul.f32 0.01, %v1038_v10  ;;  %v2528_v54 = vsel %vm1601_vm4, %v1036_v40, %v1665_v52  ;;  %vm1602_vm6 = vcmp.gt.f32.partialorder %v1038_v10, 0.0 }
 0x113   : > { %v1120_v30 = vpop.f32.mrb[19].mxu1  ;;  %v1119_v25 = vadd.f32 %v1118_v41, %v2377_v49  ;;  %v1044_v61 = vadd.f32 %v1043_v45, %v2377_v49  ;;  %v2530_v47 = vsel %vm1603_vm5, %v1113_v38, %v1667_v8  ;;  %vm1604_vm7 = vcmp.gt.f32.partialorder %v1115_v18, 0.0 }
 0x114   : > { %v1668_v51 = vmul.f32 0.01, %v1115_v18  ;;  %vm1633_vm8 = vcmp.gt.f32.partialorder %v1042_v33, 0.0  ;;  %v1121_v9 = vadd.f32 %v1120_v30, %v2377_v49  ;;  %v1697_v23 = vmul.f32 0.01, %v1042_v33 }
 0x115   : > { %v1189_v35 = vpop.f32.mrb[20].mxu0  ;;  %vm1635_vm9 = vcmp.gt.f32.partialorder %v1119_v25, 0.0  ;;  %v2536_v52 = vsel %vm1602_vm6, %v1038_v10, %v1666_v37  ;;  %v1699_v38 = vmul.f32 0.01, %v1119_v25  ;;  %vm1634_vm10 = vcmp.gt.f32.partialorder %v1044_v61, 0.0 }
 0x116   : > { %v1266_v31 = vpop.f32.mrb[20].mxu1  ;;  %v1191_v53 = vpop.f32.mrb[21].mxu0  ;;  %v1190_v32 = vadd.f32 %v1189_v35, %v2372_v4  ;;  %v1698_v8 = vmul.f32 0.01, %v1044_v61  ;;  %vm1636_vm11 = vcmp.gt.f32.partialorder %v1121_v9, 0.0  ;;  %v2547_v5 = vsel %vm1633_vm8, %v1042_v33, %v1697_v23 }
 0x117   : > { %v1268_v63 = vpop.f32.mrb[21].mxu1  ;;  %v1267_v41 = vadd.f32 %v1266_v31, %v2372_v4  ;;  %v1192_v45 = vadd.f32 %v1191_v53, %v2372_v4  ;;  %v1700_v11 = vmul.f32 0.01, %v1121_v9  ;;  %v2541_v53 = vsel %vm1604_vm7, %v1115_v18, %v1668_v51 }
 0x118   : > { %vm1605_vm12 = vcmp.gt.f32.partialorder %v1190_v32, 0.0  ;;  %v1669_v30 = vmul.f32 0.01, %v1190_v32  ;;  %v1269_v59 = vadd.f32 %v1268_v63, %v2372_v4  ;;  %v2550_v50 = vsel %vm1635_vm9, %v1119_v25, %v1699_v38 }
 0x119   : > { %v1195_v58 = vpop.f32.mrb[22].mxu0  ;;  %v1671_v35 = vmul.f32 0.01, %v1267_v41  ;;  %v1670_v6 = vmul.f32 0.01, %v1192_v45  ;;  %vm1607_vm13 = vcmp.gt.f32.partialorder %v1267_v41, 0.0  ;;  %v2556_v51 = vsel %vm1634_vm10, %v1044_v61, %v1698_v8 }
 0x11a   : > { %v1272_v16 = vpop.f32.mrb[22].mxu1  ;;  %v1197_v26 = vpop.f32.mrb[23].mxu0  ;;  %v1196_v27 = vadd.f32 %v1195_v58, %v2377_v49  ;;  %vm1606_vm14 = vcmp.gt.f32.partialorder %v1192_v45, 0.0  ;;  %v1672_v63 = vmul.f32 0.01, %v1269_v59  ;;  %v2559_v18 = vsel %vm1636_vm11, %v1121_v9, %v1700_v11 }
 0x11b   : > { %v1274_v40 = vpop.f32.mrb[23].mxu1  ;;  %v2544_v10 = vadd.f32 %v1272_v16, %v2377_v49  ;;  %v2553_v58 = vadd.f32 %v1197_v26, %v2377_v49  ;;  %v2562_v16 = vsel %vm1605_vm12, %v1190_v32, %v1669_v30  ;;  %vm1608_vm15 = vcmp.gt.f32.partialorder %v1269_v59, 0.0 }
 0x11c   : > { %v2564_v23 = vsel %vm1607_vm13, %v1267_v41, %v1671_v35  ;;  %v2566_v33 = vsel %vm1606_vm14, %v1192_v45, %v1670_v6  ;;  %v1701_v25 = vmul.f32 0.01, %v1196_v27  ;;  %vm1637_vm0 = vcmp.gt.f32.partialorder %v1196_v27, 0.0 }
 0x11d   : > { %v1343_v19 = vpop.f32.mrb[24].mxu0  ;;  %v2570_v61 = vmul.f32 0.01, %v2544_v10  ;;  %v2574_v8 = vsel %vm1608_vm15, %v1269_v59, %v1672_v63  ;;  %v2577_v6 = vmul.f32 0.01, %v2553_v58  ;;  %v2580_v41 = vadd.f32 %v1274_v40, %v2377_v49 }
 0x11e   : > { %v1420_v31 = vpop.f32.mrb[24].mxu1  ;;  %v1345_v0 = vpop.f32.mrb[25].mxu0  ;;  %v1344_v38 = vadd.f32 %v1343_v19, %v2372_v4  ;;  %v2582_v35 = vsel %vm1637_vm0, %v1196_v27, %v1701_v25  ;;  %vm1639_vm8 = vcmp.gt.f32.partialorder %v2544_v10, 0.0  ;;  %vm1638_vm9 = vcmp.gt.f32.partialorder %v2553_v58, 0.0 }
 0x11f   : > { %v1422_v37 = vpop.f32.mrb[25].mxu1  ;;  %2730 = vst [vmem:[#allocation12_spill] sm:$0xff] %v2570_v61  ;;  %v1421_v11 = vadd.f32 %v1420_v31, %v2372_v4  ;;  %v1346_v9 = vadd.f32 %v1345_v0, %v2372_v4  ;;  %2731 = vst [vmem:[#allocation13_spill] sm:$0xff] %v2577_v6  ;;  %vm1640_vm11 = vcmp.gt.f32.partialorder %v2580_v41, 0.0 }
 0x120   : > { %vm1609_vm1 = vcmp.gt.f32.partialorder %v1344_v38, 0.0  ;;  %v1673_v45 = vmul.f32 0.01, %v1344_v38  ;;  %2732 = vst [vmem:[#allocation14_spill] sm:$0xff] %v2582_v35  ;;  %v1423_v0 = vadd.f32 %v1422_v37, %v2372_v4 }
 0x121   : > { %v1349_v57 = vpop.f32.mrb[26].mxu0  ;;  %vm1611_vm2 = vcmp.gt.f32.partialorder %v1421_v11, 0.0  ;;  %v1675_v30 = vmul.f32 0.01, %v1421_v11  ;;  %vm1610_vm3 = vcmp.gt.f32.partialorder %v1346_v9, 0.0 }
 0x122   : > { %v1426_v26 = vpop.f32.mrb[26].mxu1  ;;  %v1351_v46 = vpop.f32.mrb[27].mxu0  ;;  %v1674_v31 = vmul.f32 0.01, %v1346_v9  ;;  %v1350_v59 = vadd.f32 %v1349_v57, %v2377_v49  ;;  %v1737_v44 = vsel %vm1609_vm1, %v1344_v38, %v1673_v45  ;;  %vm1612_vm4 = vcmp.gt.f32.partialorder %v1423_v0, 0.0 }
 0x123   : > { %v1428_v32 = vpop.f32.mrb[27].mxu1  ;;  %v1739_v6 = vsel %vm1611_vm2, %v1421_v11, %v1675_v30  ;;  %v1427_v40 = vadd.f32 %v1426_v26, %v2377_v49  ;;  %v1352_v61 = vadd.f32 %v1351_v46, %v2377_v49  ;;  %v1793_v43 = vmax.f32 %v2528_v54, %v1737_v44 }
 0x124   : > { %v1795_v27 = vmax.f32 %v2530_v47, %v1739_v6  ;;  %v1738_v25 = vsel %vm1610_vm3, %v1346_v9, %v1674_v31  ;;  %v1676_v37 = vmul.f32 0.01, %v1423_v0  ;;  %vm1641_vm5 = vcmp.gt.f32.partialorder %v1350_v59, 0.0 }
 0x125   : > { %v1497_v19 = vpop.f32.mrb[28].mxu0  ;;  %v1794_v57 = vmax.f32 %v2536_v52, %v1738_v25  ;;  %v1705_v46 = vmul.f32 0.01, %v1350_v59  ;;  %v2733_v44 = vmax.f32 %v2384_v60, %v2439_v55  ;;  %v2734_v47 = vmax.f32 %v2386_v1, %v2444_v62 }
 0x126   : > { %v1574_v63 = vpop.f32.mrb[28].mxu1  ;;  %v1499_v34 = vpop.f32.mrb[29].mxu0  ;;  %vm1643_vm6 = vcmp.gt.f32.partialorder %v1427_v40, 0.0  ;;  %v1707_v11 = vmul.f32 0.01, %v1427_v40  ;;  %v2735_v52 = vmax.f32 %v2388_v2, %v2448_v7  ;;  %v1740_v30 = vsel %vm1612_vm4, %v1423_v0, %v1676_v37 }
 0x127   : > { %v1576_v17 = vpop.f32.mrb[29].mxu1  ;;  %v1809_v54 = vmax.f32 %v2733_v44, %v1793_v43  ;;  %v1811_v26 = vmax.f32 %v2734_v47, %v1795_v27  ;;  %v1769_v31 = vsel %vm1641_vm5, %v1350_v59, %v1705_v46  ;;  %vm1642_vm7 = vcmp.gt.f32.partialorder %v1352_v61, 0.0 }
 0x128   : > { %v1810_v45 = vmax.f32 %v2735_v52, %v1794_v57  ;;  %v1796_v60 = vmax.f32 %v2541_v53, %v1740_v30  ;;  %v1801_v1 = vmax.f32 %v2547_v5, %v1769_v31  ;;  %v1771_v43 = vsel %vm1643_vm6, %v1427_v40, %v1707_v11 }
 0x129   : > { %v1503_v35 = vpop.f32.mrb[30].mxu0  ;;  %1825 = vst [vmem:[%s2594_s29] sm:$0xff] %v1809_v54  ;;  %1827 = vst [vmem:[%s2594_s29 + $0x10] sm:$0xff] %v1811_v26  ;;  %v1706_v55 = vmul.f32 0.01, %v1352_v61  ;;  %v1803_v62 = vmax.f32 %v2550_v50, %v1771_v43  ;;  %v1429_v27 = vadd.f32 %v1428_v32, %v2377_v49  ;;  %v1498_v2 = vadd.f32 %v1497_v19, %v2372_v4  ;;  %v2750_v43 = vld [vmem:[#allocation3_spill] sm:$0xff] }
 0x12a   : > { %v2597_v38 = vpop.f32.mrb[30].mxu1  ;;  %v1505_v9 = vpop.f32.mrb[31].mxu0  ;;  %1826 = vst [vmem:[%s2594_s29 + $0x8] sm:$0xff] %v1810_v45  ;;  %v1575_v7 = vadd.f32 %v1574_v63, %v2372_v4  ;;  %v2736_v0 = vmax.f32 %v2393_v12, %v2452_v14  ;;  %v2737_v5 = vmax.f32 %v2396_v13, %v2454_v15  ;;  %v1500_v25 = vadd.f32 %v1499_v34, %v2372_v4 }
 0x12b   : > { %v2605_v6 = vpop.f32.mrb[31].mxu1  ;;  %v1770_v40 = vsel %vm1642_vm7, %v1352_v61, %v1706_v55  ;;  %v2738_v50 = vmax.f32 %v2401_v20, %v2461_v24  ;;  %vm1644_vm10 = vcmp.gt.f32.partialorder %v1429_v27, 0.0  ;;  %v1708_v12 = vmul.f32 0.01, %v1429_v27  ;;  %v2751_v55 = vld [vmem:[#allocation7_spill] sm:$0xff] }
 0x12c   : > { %v1812_v59 = vmax.f32 %v2736_v0, %v1796_v60  ;;  %v1817_v53 = vmax.f32 %v2737_v5, %v1801_v1  ;;  %v1802_v19 = vmax.f32 %v2556_v51, %v1770_v40  ;;  %vm1613_vm12 = vcmp.gt.f32.partialorder %v1498_v2, 0.0  ;;  %v2753_v40 = vld [vmem:[#allocation4_spill] sm:$0xff] }
 0x12d   : > { %v1819_v32 = vmax.f32 %v2738_v50, %v1803_v62  ;;  %v1677_v13 = vmul.f32 0.01, %v1498_v2  ;;  %vm1615_vm13 = vcmp.gt.f32.partialorder %v1575_v7, 0.0  ;;  %v1679_v14 = vmul.f32 0.01, %v1575_v7 }
 0x12e   : > { %1828 = vst [vmem:[%s2594_s29 + $0x18] sm:$0xff] %v1812_v59  ;;  %1833 = vst [vmem:[%s2594_s29 + $0x40] sm:$0xff] %v1817_v53  ;;  %v2739_v15 = vmax.f32 %v2404_v21, %v2470_v39  ;;  %v1772_v20 = vsel %vm1644_vm10, %v1429_v27, %v1708_v12  ;;  %vm1614_vm14 = vcmp.gt.f32.partialorder %v1500_v25, 0.0  ;;  %v1678_v24 = vmul.f32 0.01, %v1500_v25 }
 0x12f   : > { %1835 = vst [vmem:[%s2594_s29 + $0x50] sm:$0xff] %v1819_v32  ;;  %v1804_v51 = vmax.f32 %v2559_v18, %v1772_v20  ;;  %v1741_v61 = vsel %vm1613_vm12, %v1498_v2, %v1677_v13  ;;  %v1743_v63 = vsel %vm1615_vm13, %v1575_v7, %v1679_v14  ;;  %v1577_v57 = vadd.f32 %v1576_v17, %v2372_v4  ;;  %v2756_v32 = vld [vmem:[#allocation5_spill] sm:$0xff]  ;;  %v2759_v14 = vld [vmem:[#allocation8_spill] sm:$0xff] }
 0x130   : > { %v1818_v34 = vmax.f32 %v2739_v15, %v1802_v19  ;;  %v1797_v37 = vmax.f32 %v2562_v16, %v1741_v61  ;;  %v1799_v46 = vmax.f32 %v2564_v23, %v1743_v63  ;;  %v1742_v44 = vsel %vm1614_vm14, %v1500_v25, %v1678_v24  ;;  %v2754_v25 = vld [vmem:[#allocation9_spill] sm:$0xff]  ;;  %v2757_v19 = vld [vmem:[#allocation10_spill] sm:$0xff]  ;;  %v2760_v15 = vld [vmem:[#allocation11_spill] sm:$0xff] }
 0x131   : > { %v1504_v21 = vadd.f32 %v1503_v35, %v2377_v49  ;;  %v2740_v39 = vmax.f32 %v2407_v22, %v2475_v48  ;;  %v1798_v18 = vmax.f32 %v2566_v33, %v1742_v44  ;;  %vm1616_vm15 = vcmp.gt.f32.partialorder %v1577_v57, 0.0 }
 0x132   : > { %1834 = vst [vmem:[%s2594_s29 + $0x48] sm:$0xff] %v1818_v34  ;;  %v1680_v47 = vmul.f32 0.01, %v1577_v57  ;;  %v2741_v4 = vmax.f32 %v2410_v28, %v2479_v36  ;;  %v2742_v16 = vmax.f32 %v2412_v29, %v2483_v56  ;;  %v2743_v22 = vmax.f32 %v2421_v42, %v2487_v3  ;;  %v2744_v42 = vld [vmem:[#allocation14_spill] sm:$0xff] }
 0x133   : > { %v1820_v54 = vmax.f32 %v2740_v39, %v1804_v51  ;;  %vm1645_vm0 = vcmp.gt.f32.partialorder %v1504_v21, 0.0  ;;  %v1709_v35 = vmul.f32 0.01, %v1504_v21  ;;  %v1581_v33 = vadd.f32 %v2597_v38, %v2377_v49  ;;  %v2745_v38 = vld [vmem:[#allocation2_spill] sm:$0xff] }
 0x134   : > { %v1813_v17 = vmax.f32 %v2741_v4, %v1797_v37  ;;  %v1815_v23 = vmax.f32 %v2742_v16, %v1799_v46  ;;  %v1814_v48 = vmax.f32 %v2743_v22, %v1798_v18  ;;  %v1744_v26 = vsel %vm1616_vm15, %v1577_v57, %v1680_v47 }
 0x135   : > { %1836 = vst [vmem:[%s2594_s29 + $0x58] sm:$0xff] %v1820_v54  ;;  %v1506_v11 = vadd.f32 %v1505_v9, %v2377_v49  ;;  %v1704_v28 = vmul.f32 0.01, %v2580_v41  ;;  %v1800_v29 = vmax.f32 %v2574_v8, %v1744_v26  ;;  %v1773_v36 = vsel %vm1645_vm0, %v1504_v21, %v1709_v35  ;;  %v2746_v9 = vld [vmem:[#allocation6_spill] sm:$0xff]  ;;  %v2748_v8 = vld [vmem:[#allocation12_spill] sm:$0xff] }
 0x136   : > { %1829 = vst [vmem:[%s2594_s29 + $0x20] sm:$0xff] %v1813_v17  ;;  %1831 = vst [vmem:[%s2594_s29 + $0x30] sm:$0xff] %v1815_v23  ;;  %v1583_v56 = vadd.f32 %v2605_v6, %v2377_v49  ;;  %v1805_v3 = vmax.f32 %v2744_v42, %v1773_v36  ;;  %vm1647_vm1 = vcmp.gt.f32.partialorder %v1581_v33, 0.0  ;;  %v1711_v52 = vmul.f32 0.01, %v1581_v33  ;;  %v2749_v6 = vld [vmem:[#allocation13_spill] sm:$0xff] }
 0x137   : > { %1830 = vst [vmem:[%s2594_s29 + $0x28] sm:$0xff] %v1814_v48  ;;  %vm1646_vm2 = vcmp.gt.f32.partialorder %v1506_v11, 0.0  ;;  %v2747_v45 = vmax.f32 %v2745_v38, %v2746_v9  ;;  %v1710_v31 = vmul.f32 0.01, %v1506_v11  ;;  %v1767_v49 = vsel %vm1639_vm8, %v2544_v10, %v2748_v8 }
 0x138   : > { %vm1648_vm3 = vcmp.gt.f32.partialorder %v1583_v56, 0.0  ;;  %v1712_v60 = vmul.f32 0.01, %v1583_v56  ;;  %v1766_v1 = vsel %vm1638_vm9, %v2553_v58, %v2749_v6  ;;  %v2752_v62 = vmax.f32 %v2750_v43, %v2751_v55 }
 0x139   : > { %v1816_v30 = vmax.f32 %v2747_v45, %v1800_v29  ;;  %v1775_v2 = vsel %vm1647_vm1, %v1581_v33, %v1711_v52  ;;  %v1768_v7 = vsel %vm1640_vm11, %v2580_v41, %v1704_v28  ;;  %v1774_v59 = vsel %vm1646_vm2, %v1506_v11, %v1710_v31 }
 0x13a   : > { %v1821_v27 = vmax.f32 %v2752_v62, %v1805_v3  ;;  %v1807_v0 = vmax.f32 %v1767_v49, %v1775_v2  ;;  %v1776_v10 = vsel %vm1648_vm3, %v1583_v56, %v1712_v60  ;;  %v1806_v5 = vmax.f32 %v1766_v1, %v1774_v59 }
 0x13b   : > { %1832 = vst [vmem:[%s2594_s29 + $0x38] sm:$0xff] %v1816_v30  ;;  %v1808_v53 = vmax.f32 %v1768_v7, %v1776_v10  ;;  %v2755_v58 = vmax.f32 %v2753_v40, %v2754_v25  ;;  %v2758_v12 = vmax.f32 %v2756_v32, %v2757_v19  ;;  %v2761_v34 = vmax.f32 %v2759_v14, %v2760_v15 }
 0x13c   : > { %1837 = vst [vmem:[%s2594_s29 + $0x60] sm:$0xff] %v1821_v27 }
 0x13d   : > { %v1823_v50 = vmax.f32 %v2755_v58, %v1807_v0  ;;  %v1822_v13 = vmax.f32 %v2758_v12, %v1806_v5  ;;  %v1824_v20 = vmax.f32 %v2761_v34, %v1808_v53 }
 0x13f   : > { %1839 = vst [vmem:[%s2594_s29 + $0x70] sm:$0xff] %v1823_v50  ;;  %1838 = vst [vmem:[%s2594_s29 + $0x68] sm:$0xff] %v1822_v13 }
 0x140   : > { %1840 = vst [vmem:[%s2594_s29 + $0x78] sm:$0xff] %v1824_v20 }
 0x141 PF: > { %s13_s12 = sadd.s32 1, %s2087_s12  }
 0x142   : > { %p10_p4 = scmp.ge.s32.totalorder %s13_s12, 4  }
 0x144   :  { %12 = sbr.rel (!%p10_p4) target bundleno = 1 (0x1), region = 62 }

// kernel: conv_class_forward.4
= control target key start
LH: loop header
LB: loop body
LE: loop exit
PB: predicated region body
PF: predicated region fallthrough
CT: control target
= control target key end

     0   :  { %s897_s12 = smov 0   ;;  %s1089_s0 = inlined_call_operand.vmem [shape: f32[2,144,1024], index: 0, kind: input, shape index: {}]   ;;  %s1090_s1 = inlined_call_operand.vmem [shape: f32[8,144], index: 1, kind: input, shape index: {}]   ;;  %s1091_s2 = inlined_call_operand.vmem [shape: f32[8,1], index: 2, kind: input, shape index: {}]   ;;  %s1092_s3 = inlined_call_operand.vmem [shape: f32[2,8,256], index: 3, kind: output, shape index: {}]  }
   0x1 LB: > { %s698_s13 = sadd.s32 4294967295, %s874_s12   ;;  %p702_p0 = scmp.ge.s32.totalorder %s874_s12, 1  ;;  %s874_s12 = sphi %s897_s12, %s13_s12  }
   0x2   : > { %p137_p1 = scmp.lt.s32.totalorder %s874_s12, 3 }
   0x4   : > { %p138_p2 = pnand %p702_p0, %p137_p1 }
   0x5   : > { %p161_p3 = scmp.lt.s32.totalorder (!%p138_p2), %s698_s13, 1  ;;  %v908_v0 = vld [vmem:[%s1090_s1 + $0x8] sm:$0xff] (!%p138_p2)  ;;  %vm323_vm0 = vcmask (!%p138_p2), 130048   ;;  %v317_v1 = vld [vmem:[%s1091_s2] sm:$0xff] (!%p138_p2)  ;;  %v876_v2 = vmov (!%p138_p2), 0  }
   0x6   : > { %141 = sbr.rel (%p138_p2) target bundleno = 317 (0x13d), region = 32  ;;  %706 = vmatprep.mubr.msk.f32.mxu0 (!%p138_p2), %vm323_vm0, %v908_v0  ;;  %707 = vmatprep.mubr.msk.f32.mxu1 (!%p138_p2), %vm323_vm0, %v908_v0 }
   0x7   : > { %867 = vset.pattern.permute.xlu0 (!%p138_p2), %v876_v2 }
   0x8   : > { %320 = vperm.xlu0 (!%p138_p2), %867, %v317_v1  }
   0xd   : > { %s1094_s13 = smov (!%p161_p3, %s698_s13), 1 }
   0xe   : > { %s857_s18 = smul.u32 1152, %s1094_s13  ;;  %s712_s24 = sshll.u32 %s1094_s13, 4 }
   0xf   : > { %s170_s27 = scalar_lea.vmem %s1092_s3, %s712_s24 }
  0x10   : > { %s923_s21 = scalar_lea.vmem %s1089_s0, %s857_s18 }
  0x11   : > { %v174_v3 = vld [vmem:[%s923_s21 + $0x8] sm:$0xff]  ;;  %v176_v5 = vld [vmem:[%s923_s21 + $0x18] sm:$0xff]  ;;  %v173_v8 = vld [vmem:[%s923_s21] sm:$0xff] }
  0x12   : > { %v182_v4 = vld [vmem:[%s923_s21 + $0x48] sm:$0xff]  ;;  %v184_v7 = vld [vmem:[%s923_s21 + $0x58] sm:$0xff]  ;;  %v181_v9 = vld [vmem:[%s923_s21 + $0x40] sm:$0xff] }
  0x13   : > { %v713_v6 = vpack.c.bf16 %v182_v4, %v174_v3  ;;  %v749_v10 = vpack.c.bf16 %v184_v7, %v176_v5  ;;  %v715_v11 = vpack.c.bf16 %v181_v9, %v173_v8  ;;  %v175_v12 = vld [vmem:[%s923_s21 + $0x10] sm:$0xff]  ;;  %v190_v14 = vld [vmem:[%s923_s21 + $0x88] sm:$0xff]  ;;  %v192_v17 = vld [vmem:[%s923_s21 + $0x98] sm:$0xff] }
  0x14   : > { %v183_v13 = vld [vmem:[%s923_s21 + $0x50] sm:$0xff]  ;;  %v198_v16 = vld [vmem:[%s923_s21 + $0xc8] sm:$0xff]  ;;  %v200_v18 = vld [vmem:[%s923_s21 + $0xd8] sm:$0xff] }
  0x15   : > { %714 = vmatprep.subr.bf16.mxu0 %v713_v6  ;;  %v751_v15 = vpack.c.bf16 %v183_v13, %v175_v12  ;;  %750 = vmatprep.subr.bf16.mxu1 %v749_v10  ;;  %v717_v19 = vpack.c.bf16 %v198_v16, %v190_v14  ;;  %v753_v20 = vpack.c.bf16 %v200_v18, %v192_v17  ;;  %v189_v21 = vld [vmem:[%s923_s21 + $0x80] sm:$0xff]  ;;  %v191_v23 = vld [vmem:[%s923_s21 + $0x90] sm:$0xff]  ;;  %v206_v26 = vld [vmem:[%s923_s21 + $0x108] sm:$0xff] }
  0x16   : > { %716 = vmatpush1.bf16.msra.mxu0 %v715_v11  ;;  %v197_v22 = vld [vmem:[%s923_s21 + $0xc0] sm:$0xff]  ;;  %v199_v25 = vld [vmem:[%s923_s21 + $0xd0] sm:$0xff]  ;;  %v214_v27 = vld [vmem:[%s923_s21 + $0x148] sm:$0xff] }
  0x17   : > { %752 = vmatpush1.bf16.msra.mxu1 %v751_v15  ;;  %v719_v24 = vpack.c.bf16 %v197_v22, %v189_v21  ;;  %718 = vmatprep.subr.bf16.mxu0 %v717_v19  ;;  %v755_v28 = vpack.c.bf16 %v199_v25, %v191_v23  ;;  %v721_v29 = vpack.c.bf16 %v214_v27, %v206_v26  ;;  %v208_v30 = vld [vmem:[%s923_s21 + $0x118] sm:$0xff]  ;;  %v205_v32 = vld [vmem:[%s923_s21 + $0x100] sm:$0xff]  ;;  %v207_v35 = vld [vmem:[%s923_s21 + $0x110] sm:$0xff] }
  0x18   : > { %754 = vmatprep.subr.bf16.mxu1 %v753_v20  ;;  %v216_v31 = vld [vmem:[%s923_s21 + $0x158] sm:$0xff]  ;;  %v213_v34 = vld [vmem:[%s923_s21 + $0x140] sm:$0xff]  ;;  %v215_v36 = vld [vmem:[%s923_s21 + $0x150] sm:$0xff] }
  0x19   : > { %v757_v33 = vpack.c.bf16 %v216_v31, %v208_v30  ;;  %v723_v37 = vpack.c.bf16 %v213_v34, %v205_v32  ;;  %v222_v38 = vld [vmem:[%s923_s21 + $0x188] sm:$0xff]  ;;  %v224_v40 = vld [vmem:[%s923_s21 + $0x198] sm:$0xff]  ;;  %v759_v41 = vpack.c.bf16 %v215_v36, %v207_v35  ;;  %v221_v44 = vld [vmem:[%s923_s21 + $0x180] sm:$0xff] }
  0x1a   : > { %720 = vmatpush1.bf16.msra.mxu0 %v719_v24  ;;  %v230_v39 = vld [vmem:[%s923_s21 + $0x1c8] sm:$0xff]  ;;  %v232_v43 = vld [vmem:[%s923_s21 + $0x1d8] sm:$0xff]  ;;  %v229_v45 = vld [vmem:[%s923_s21 + $0x1c0] sm:$0xff] }
  0x1b   : > { %756 = vmatpush1.bf16.msra.mxu1 %v755_v28  ;;  %722 = vmatprep.subr.bf16.mxu0 %v721_v29  ;;  %v725_v42 = vpack.c.bf16 %v230_v39, %v222_v38  ;;  %v761_v46 = vpack.c.bf16 %v232_v43, %v224_v40  ;;  %v223_v47 = vld [vmem:[%s923_s21 + $0x190] sm:$0xff]  ;;  %v238_v49 = vld [vmem:[%s923_s21 + $0x208] sm:$0xff]  ;;  %v240_v51 = vld [vmem:[%s923_s21 + $0x218] sm:$0xff]  ;;  %v727_v53 = vpack.c.bf16 %v229_v45, %v221_v44 }
  0x1c   : > { %758 = vmatprep.subr.bf16.mxu1 %v757_v33  ;;  %v231_v48 = vld [vmem:[%s923_s21 + $0x1d0] sm:$0xff]  ;;  %v246_v50 = vld [vmem:[%s923_s21 + $0x248] sm:$0xff]  ;;  %v248_v52 = vld [vmem:[%s923_s21 + $0x258] sm:$0xff] }
  0x1d   : > { %v763_v54 = vpack.c.bf16 %v231_v48, %v223_v47  ;;  %v729_v55 = vpack.c.bf16 %v246_v50, %v238_v49  ;;  %v237_v56 = vld [vmem:[%s923_s21 + $0x200] sm:$0xff]  ;;  %v239_v58 = vld [vmem:[%s923_s21 + $0x210] sm:$0xff]  ;;  %v765_v59 = vpack.c.bf16 %v248_v52, %v240_v51  ;;  %v254_v61 = vld [vmem:[%s923_s21 + $0x288] sm:$0xff] }
  0x1e   : > { %724 = vmatpush1.bf16.msra.mxu0 %v723_v37  ;;  %v245_v57 = vld [vmem:[%s923_s21 + $0x240] sm:$0xff]  ;;  %v247_v60 = vld [vmem:[%s923_s21 + $0x250] sm:$0xff]  ;;  %v262_v62 = vld [vmem:[%s923_s21 + $0x2c8] sm:$0xff] }
  0x1f   : > { %760 = vmatpush1.bf16.msra.mxu1 %v759_v41  ;;  %726 = vmatprep.subr.bf16.mxu0 %v725_v42  ;;  %v256_v63 = vld [vmem:[%s923_s21 + $0x298] sm:$0xff]  ;;  %v731_v2 = vpack.c.bf16 %v245_v57, %v237_v56  ;;  %v767_v3 = vpack.c.bf16 %v247_v60, %v239_v58  ;;  %v733_v4 = vpack.c.bf16 %v262_v62, %v254_v61  ;;  %v253_v5 = vld [vmem:[%s923_s21 + $0x280] sm:$0xff]  ;;  %v255_v7 = vld [vmem:[%s923_s21 + $0x290] sm:$0xff] }
  0x20   : > { %762 = vmatprep.subr.bf16.mxu1 %v761_v46  ;;  %v264_v1 = vld [vmem:[%s923_s21 + $0x2d8] sm:$0xff]  ;;  %v261_v6 = vld [vmem:[%s923_s21 + $0x2c0] sm:$0xff]  ;;  %v263_v9 = vld [vmem:[%s923_s21 + $0x2d0] sm:$0xff] }
  0x21   : > { %v769_v8 = vpack.c.bf16 %v264_v1, %v256_v63  ;;  %v270_v10 = vld [vmem:[%s923_s21 + $0x308] sm:$0xff]  ;;  %v272_v12 = vld [vmem:[%s923_s21 + $0x318] sm:$0xff]  ;;  %v735_v14 = vpack.c.bf16 %v261_v6, %v253_v5  ;;  %v771_v15 = vpack.c.bf16 %v263_v9, %v255_v7  ;;  %v269_v17 = vld [vmem:[%s923_s21 + $0x300] sm:$0xff] }
  0x22   : > { %728 = vmatpush1.bf16.msra.mxu0 %v727_v53  ;;  %v278_v11 = vld [vmem:[%s923_s21 + $0x348] sm:$0xff]  ;;  %v280_v13 = vld [vmem:[%s923_s21 + $0x358] sm:$0xff]  ;;  %v277_v18 = vld [vmem:[%s923_s21 + $0x340] sm:$0xff] }
  0x23   : > { %764 = vmatpush1.bf16.msra.mxu1 %v763_v54  ;;  %730 = vmatprep.subr.bf16.mxu0 %v729_v55  ;;  %v737_v16 = vpack.c.bf16 %v278_v11, %v270_v10  ;;  %v271_v19 = vld [vmem:[%s923_s21 + $0x310] sm:$0xff]  ;;  %v773_v20 = vpack.c.bf16 %v280_v13, %v272_v12  ;;  %v286_v22 = vld [vmem:[%s923_s21 + $0x388] sm:$0xff]  ;;  %v288_v24 = vld [vmem:[%s923_s21 + $0x398] sm:$0xff]  ;;  %v739_v26 = vpack.c.bf16 %v277_v18, %v269_v17 }
  0x24   : > { %766 = vmatprep.subr.bf16.mxu1 %v765_v59  ;;  %v279_v21 = vld [vmem:[%s923_s21 + $0x350] sm:$0xff]  ;;  %v294_v23 = vld [vmem:[%s923_s21 + $0x3c8] sm:$0xff]  ;;  %v296_v25 = vld [vmem:[%s923_s21 + $0x3d8] sm:$0xff] }
  0x25   : > { %v775_v27 = vpack.c.bf16 %v279_v21, %v271_v19  ;;  %v741_v28 = vpack.c.bf16 %v294_v23, %v286_v22  ;;  %v285_v29 = vld [vmem:[%s923_s21 + $0x380] sm:$0xff]  ;;  %v287_v31 = vld [vmem:[%s923_s21 + $0x390] sm:$0xff]  ;;  %v777_v32 = vpack.c.bf16 %v296_v25, %v288_v24  ;;  %v302_v34 = vld [vmem:[%s923_s21 + $0x408] sm:$0xff] }
  0x26   : > { %732 = vmatpush1.bf16.msra.mxu0 %v731_v2  ;;  %v293_v30 = vld [vmem:[%s923_s21 + $0x3c0] sm:$0xff]  ;;  %v295_v33 = vld [vmem:[%s923_s21 + $0x3d0] sm:$0xff]  ;;  %v310_v35 = vld [vmem:[%s923_s21 + $0x448] sm:$0xff] }
  0x27   : > { %768 = vmatpush1.bf16.msra.mxu1 %v767_v3  ;;  %734 = vmatprep.subr.bf16.mxu0 %v733_v4  ;;  %v304_v36 = vld [vmem:[%s923_s21 + $0x418] sm:$0xff]  ;;  %v743_v38 = vpack.c.bf16 %v293_v30, %v285_v29  ;;  %v779_v39 = vpack.c.bf16 %v295_v33, %v287_v31  ;;  %v745_v40 = vpack.c.bf16 %v310_v35, %v302_v34  ;;  %v301_v41 = vld [vmem:[%s923_s21 + $0x400] sm:$0xff]  ;;  %v303_v43 = vld [vmem:[%s923_s21 + $0x410] sm:$0xff] }
  0x28   : > { %770 = vmatprep.subr.bf16.mxu1 %v769_v8  ;;  %v312_v37 = vld [vmem:[%s923_s21 + $0x458] sm:$0xff]  ;;  %v309_v42 = vld [vmem:[%s923_s21 + $0x440] sm:$0xff]  ;;  %v311_v45 = vld [vmem:[%s923_s21 + $0x450] sm:$0xff] }
  0x29   : > { %v781_v44 = vpack.c.bf16 %v312_v37, %v304_v36  ;;  %v178_v46 = vld [vmem:[%s923_s21 + $0x28] sm:$0xff]  ;;  %v180_v48 = vld [vmem:[%s923_s21 + $0x38] sm:$0xff]  ;;  %v747_v50 = vpack.c.bf16 %v309_v42, %v301_v41  ;;  %v783_v51 = vpack.c.bf16 %v311_v45, %v303_v43  ;;  %v177_v53 = vld [vmem:[%s923_s21 + $0x20] sm:$0xff] }
  0x2a   : > { %736 = vmatpush1.bf16.msra.mxu0 %v735_v14  ;;  %v186_v47 = vld [vmem:[%s923_s21 + $0x68] sm:$0xff]  ;;  %v188_v49 = vld [vmem:[%s923_s21 + $0x78] sm:$0xff]  ;;  %v185_v54 = vld [vmem:[%s923_s21 + $0x60] sm:$0xff] }
  0x2b   : > { %772 = vmatpush1.bf16.msra.mxu1 %v771_v15  ;;  %738 = vmatprep.subr.bf16.mxu0 %v737_v16  ;;  %v785_v52 = vpack.c.bf16 %v186_v47, %v178_v46  ;;  %v179_v55 = vld [vmem:[%s923_s21 + $0x30] sm:$0xff]  ;;  %v821_v56 = vpack.c.bf16 %v188_v49, %v180_v48  ;;  %v194_v58 = vld [vmem:[%s923_s21 + $0xa8] sm:$0xff]  ;;  %v196_v60 = vld [vmem:[%s923_s21 + $0xb8] sm:$0xff]  ;;  %v787_v63 = vpack.c.bf16 %v185_v54, %v177_v53 }
  0x2c   : > { %774 = vmatprep.subr.bf16.mxu1 %v773_v20  ;;  %v187_v57 = vld [vmem:[%s923_s21 + $0x70] sm:$0xff]  ;;  %v202_v59 = vld [vmem:[%s923_s21 + $0xe8] sm:$0xff]  ;;  %v204_v61 = vld [vmem:[%s923_s21 + $0xf8] sm:$0xff] }
  0x2d   : > { %v1012_v62 = vld [vmem:[%s1090_s1] sm:$0xff]  ;;  %v823_v1 = vpack.c.bf16 %v187_v57, %v179_v55  ;;  %v789_v2 = vpack.c.bf16 %v202_v59, %v194_v58  ;;  %v195_v5 = vld [vmem:[%s923_s21 + $0xb0] sm:$0xff]  ;;  %v825_v6 = vpack.c.bf16 %v204_v61, %v196_v60  ;;  %v210_v8 = vld [vmem:[%s923_s21 + $0x128] sm:$0xff] }
  0x2e   : > { %740 = vmatpush1.bf16.msra.mxu0 %v739_v26  ;;  %v193_v3 = vld [vmem:[%s923_s21 + $0xa0] sm:$0xff]  ;;  %v203_v7 = vld [vmem:[%s923_s21 + $0xf0] sm:$0xff]  ;;  %v218_v9 = vld [vmem:[%s923_s21 + $0x168] sm:$0xff] }
  0x2f   : > { %776 = vmatpush1.bf16.msra.mxu1 %v775_v27  ;;  %742 = vmatprep.subr.bf16.mxu0 %v741_v28  ;;  %v201_v4 = vld [vmem:[%s923_s21 + $0xe0] sm:$0xff]  ;;  %v212_v10 = vld [vmem:[%s923_s21 + $0x138] sm:$0xff]  ;;  %v827_v13 = vpack.c.bf16 %v203_v7, %v195_v5  ;;  %v793_v14 = vpack.c.bf16 %v218_v9, %v210_v8  ;;  %v211_v17 = vld [vmem:[%s923_s21 + $0x130] sm:$0xff] }
  0x30   : > { %778 = vmatprep.subr.bf16.mxu1 %v777_v32  ;;  %v220_v11 = vld [vmem:[%s923_s21 + $0x178] sm:$0xff]  ;;  %v791_v12 = vpack.c.bf16 %v201_v4, %v193_v3  ;;  %v209_v15 = vld [vmem:[%s923_s21 + $0x120] sm:$0xff]  ;;  %v219_v19 = vld [vmem:[%s923_s21 + $0x170] sm:$0xff] }
  0x31   : > { %v217_v16 = vld [vmem:[%s923_s21 + $0x160] sm:$0xff]  ;;  %v829_v18 = vpack.c.bf16 %v220_v11, %v212_v10  ;;  %v226_v20 = vld [vmem:[%s923_s21 + $0x1a8] sm:$0xff]  ;;  %v228_v22 = vld [vmem:[%s923_s21 + $0x1b8] sm:$0xff]  ;;  %v831_v25 = vpack.c.bf16 %v219_v19, %v211_v17 }
  0x32   : > { %744 = vmatpush1.bf16.msra.mxu0 %v743_v38  ;;  %v234_v21 = vld [vmem:[%s923_s21 + $0x1e8] sm:$0xff]  ;;  %v236_v23 = vld [vmem:[%s923_s21 + $0x1f8] sm:$0xff]  ;;  %v795_v24 = vpack.c.bf16 %v217_v16, %v209_v15  ;;  %v225_v27 = vld [vmem:[%s923_s21 + $0x1a0] sm:$0xff] }
  0x33   : > { %780 = vmatpush1.bf16.msra.mxu1 %v779_v39  ;;  %746 = vmatprep.subr.bf16.mxu0 %v745_v40  ;;  %v797_v26 = vpack.c.bf16 %v234_v21, %v226_v20  ;;  %v233_v28 = vld [vmem:[%s923_s21 + $0x1e0] sm:$0xff]  ;;  %v227_v29 = vld [vmem:[%s923_s21 + $0x1b0] sm:$0xff]  ;;  %v833_v30 = vpack.c.bf16 %v236_v23, %v228_v22  ;;  %v242_v32 = vld [vmem:[%s923_s21 + $0x228] sm:$0xff] }
  0x34   : > { %782 = vmatprep.subr.bf16.mxu1 %v781_v44  ;;  %v235_v31 = vld [vmem:[%s923_s21 + $0x1f0] sm:$0xff]  ;;  %v244_v33 = vld [vmem:[%s923_s21 + $0x238] sm:$0xff]  ;;  %v799_v35 = vpack.c.bf16 %v233_v28, %v225_v27  ;;  %v241_v38 = vld [vmem:[%s923_s21 + $0x220] sm:$0xff] }
  0x35   : > { %v252_v34 = vld [vmem:[%s923_s21 + $0x278] sm:$0xff]  ;;  %v835_v36 = vpack.c.bf16 %v235_v31, %v227_v29  ;;  %v249_v39 = vld [vmem:[%s923_s21 + $0x260] sm:$0xff]  ;;  %v243_v40 = vld [vmem:[%s923_s21 + $0x230] sm:$0xff] }
  0x36   : > { %748 = vmatpush1.bf16.msra.mxu0 %v747_v50  ;;  %v837_v41 = vpack.c.bf16 %v252_v34, %v244_v33  ;;  %v251_v42 = vld [vmem:[%s923_s21 + $0x270] sm:$0xff]  ;;  %v258_v43 = vld [vmem:[%s923_s21 + $0x2a8] sm:$0xff]  ;;  %v260_v45 = vld [vmem:[%s923_s21 + $0x2b8] sm:$0xff]  ;;  %v803_v47 = vpack.c.bf16 %v249_v39, %v241_v38 }
  0x37   : > { %784 = vmatpush1.bf16.msra.mxu1 %v783_v51  ;;  %786 = vmatprep.subr.bf16.mxu0 %v785_v52  ;;  %v266_v44 = vld [vmem:[%s923_s21 + $0x2e8] sm:$0xff]  ;;  %v268_v46 = vld [vmem:[%s923_s21 + $0x2f8] sm:$0xff]  ;;  %v839_v48 = vpack.c.bf16 %v251_v42, %v243_v40  ;;  %v257_v50 = vld [vmem:[%s923_s21 + $0x2a0] sm:$0xff] }
  0x38   : > { %822 = vmatprep.subr.bf16.mxu1 %v821_v56  ;;  %v805_v49 = vpack.c.bf16 %v266_v44, %v258_v43  ;;  %v265_v51 = vld [vmem:[%s923_s21 + $0x2e0] sm:$0xff]  ;;  %v259_v52 = vld [vmem:[%s923_s21 + $0x2b0] sm:$0xff]  ;;  %v841_v53 = vpack.c.bf16 %v268_v46, %v260_v45  ;;  %v274_v55 = vld [vmem:[%s923_s21 + $0x328] sm:$0xff] }
  0x39   : > { %392 = vmatmul.mubr.f32.vlgmr.msra.gmra.mrb[0].mxu0 %v1012_v62  ;;  %v267_v54 = vld [vmem:[%s923_s21 + $0x2f0] sm:$0xff]  ;;  %v282_v56 = vld [vmem:[%s923_s21 + $0x368] sm:$0xff]  ;;  %v276_v57 = vld [vmem:[%s923_s21 + $0x338] sm:$0xff]  ;;  %v807_v59 = vpack.c.bf16 %v265_v51, %v257_v50 }
  0x3a   : > { %463 = vmatmul.mubr.f32.vlgmr.msra.gmra.mrb[0].mxu1 %v1012_v62  ;;  %788 = vmatpush1.bf16.msra.mxu0 %v787_v63  ;;  %v284_v58 = vld [vmem:[%s923_s21 + $0x378] sm:$0xff]  ;;  %v843_v60 = vpack.c.bf16 %v267_v54, %v259_v52  ;;  %v809_v61 = vpack.c.bf16 %v282_v56, %v274_v55  ;;  %v273_v63 = vld [vmem:[%s923_s21 + $0x320] sm:$0xff]  ;;  %v283_v4 = vld [vmem:[%s923_s21 + $0x370] sm:$0xff] }
  0x3b   : > { %824 = vmatpush1.bf16.msra.mxu1 %v823_v1  ;;  %790 = vmatprep.subr.bf16.mxu0 %v789_v2  ;;  %v281_v1 = vld [vmem:[%s923_s21 + $0x360] sm:$0xff]  ;;  %v275_v2 = vld [vmem:[%s923_s21 + $0x330] sm:$0xff]  ;;  %v845_v3 = vpack.c.bf16 %v284_v58, %v276_v57  ;;  %v290_v5 = vld [vmem:[%s923_s21 + $0x3a8] sm:$0xff] }
  0x3c   : > { %826 = vmatprep.subr.bf16.mxu1 %v825_v6  ;;  %708 = vmatprep.mubr.msk.f32.mxu0 %vm323_vm0, %v908_v0  ;;  %v298_v6 = vld [vmem:[%s923_s21 + $0x3e8] sm:$0xff]  ;;  %v292_v7 = vld [vmem:[%s923_s21 + $0x3b8] sm:$0xff]  ;;  %v811_v9 = vpack.c.bf16 %v281_v1, %v273_v63  ;;  %v847_v10 = vpack.c.bf16 %v283_v4, %v275_v2  ;;  %v299_v16 = vld [vmem:[%s923_s21 + $0x3f0] sm:$0xff] }
  0x3d   : > { %709 = vmatprep.mubr.msk.f32.mxu1 %vm323_vm0, %v908_v0  ;;  %v250_v0 = vld [vmem:[%s923_s21 + $0x268] sm:$0xff]  ;;  %v300_v8 = vld [vmem:[%s923_s21 + $0x3f8] sm:$0xff]  ;;  %v813_v11 = vpack.c.bf16 %v298_v6, %v290_v5  ;;  %v307_v27 = vld [vmem:[%s923_s21 + $0x430] sm:$0xff] }
  0x3e   : > { %792 = vmatpush1.bf16.msra.mxu0 %v791_v12  ;;  %v801_v37 = vpack.c.bf16 %v250_v0, %v242_v32  ;;  %v289_v12 = vld [vmem:[%s923_s21 + $0x3a0] sm:$0xff]  ;;  %v849_v15 = vpack.c.bf16 %v300_v8, %v292_v7  ;;  %v306_v17 = vld [vmem:[%s923_s21 + $0x428] sm:$0xff]  ;;  %v308_v19 = vld [vmem:[%s923_s21 + $0x438] sm:$0xff] }
  0x3f   : > { %828 = vmatpush1.bf16.msra.mxu1 %v827_v13  ;;  %794 = vmatprep.subr.bf16.mxu0 %v793_v14  ;;  %v297_v13 = vld [vmem:[%s923_s21 + $0x3e0] sm:$0xff]  ;;  %v291_v14 = vld [vmem:[%s923_s21 + $0x3b0] sm:$0xff]  ;;  %v316_v20 = vld [vmem:[%s923_s21 + $0x478] sm:$0xff] }
  0x40   : > { %830 = vmatprep.subr.bf16.mxu1 %v829_v18  ;;  %v314_v18 = vld [vmem:[%s923_s21 + $0x468] sm:$0xff]  ;;  %v815_v21 = vpack.c.bf16 %v297_v13, %v289_v12  ;;  %v851_v22 = vpack.c.bf16 %v299_v16, %v291_v14  ;;  %v315_v28 = vld [vmem:[%s923_s21 + $0x470] sm:$0xff] }
  0x41   : > { %v817_v23 = vpack.c.bf16 %v314_v18, %v306_v17 }
  0x42   : > { %796 = vmatpush1.bf16.msra.mxu0 %v795_v24  ;;  %v305_v24 = vld [vmem:[%s923_s21 + $0x420] sm:$0xff] }
  0x43   : > { %832 = vmatpush1.bf16.msra.mxu1 %v831_v25  ;;  %798 = vmatprep.subr.bf16.mxu0 %v797_v26  ;;  %v313_v25 = vld [vmem:[%s923_s21 + $0x460] sm:$0xff]  ;;  %v853_v26 = vpack.c.bf16 %v316_v20, %v308_v19 }
  0x44   : > { %834 = vmatprep.subr.bf16.mxu1 %v833_v30  ;;  %v819_v29 = vpack.c.bf16 %v313_v25, %v305_v24  ;;  %v855_v30 = vpack.c.bf16 %v315_v28, %v307_v27 }
  0x46   : > { %800 = vmatpush1.bf16.msra.mxu0 %v799_v35 }
  0x47   : > { %836 = vmatpush1.bf16.msra.mxu1 %v835_v36  ;;  %802 = vmatprep.subr.bf16.mxu0 %v801_v37 }
  0x48   : > { %838 = vmatprep.subr.bf16.mxu1 %v837_v41 }
  0x4a   : > { %804 = vmatpush1.bf16.msra.mxu0 %v803_v47 }
  0x4b   : > { %840 = vmatpush1.bf16.msra.mxu1 %v839_v48  ;;  %806 = vmatprep.subr.bf16.mxu0 %v805_v49 }
  0x4c   : > { %842 = vmatprep.subr.bf16.mxu1 %v841_v53 }
  0x4e   : > { %808 = vmatpush1.bf16.msra.mxu0 %v807_v59 }
  0x4f   : > { %844 = vmatpush1.bf16.msra.mxu1 %v843_v60  ;;  %810 = vmatprep.subr.bf16.mxu0 %v809_v61 }
  0x50   : > { %846 = vmatprep.subr.bf16.mxu1 %v845_v3 }
  0x52   : > { %812 = vmatpush1.bf16.msra.mxu0 %v811_v9 }
  0x53   : > { %848 = vmatpush1.bf16.msra.mxu1 %v847_v10  ;;  %814 = vmatprep.subr.bf16.mxu0 %v813_v11 }
  0x54   : > { %850 = vmatprep.subr.bf16.mxu1 %v849_v15 }
  0x56   : > { %816 = vmatpush1.bf16.msra.mxu0 %v815_v21 }
  0x57   : > { %852 = vmatpush1.bf16.msra.mxu1 %v851_v22  ;;  %818 = vmatprep.subr.bf16.mxu0 %v817_v23 }
  0x58   : > { %854 = vmatprep.subr.bf16.mxu1 %v853_v26 }
  0x5a   : > { %820 = vmatpush1.bf16.msra.mxu0 %v819_v29 }
  0x5b   : > { %856 = vmatpush1.bf16.msra.mxu1 %v855_v30 }
  0x5d   : > { %534 = vmatmul.mubr.f32.vlgmr.msra.gmra.mrb[2].mxu0 %v1012_v62 }
  0x5e   : > { %605 = vmatmul.mubr.f32.vlgmr.msra.gmra.mrb[2].mxu1 %v1012_v62 }
  0x87   : > { %v321_v31 = vpop.permute.xlu0 %320 }
 0x10c   : > { %v393_v32 = vpop.f32.mrb[0].mxu0 }
 0x10d   : > { %v394_v0 = vadd.f32 %v393_v32, %v321_v31  ;;  %v464_v33 = vpop.f32.mrb[0].mxu1  ;;  %v395_v34 = vpop.f32.mrb[1].mxu0 }
 0x10e   : > { %v465_v35 = vadd.f32 %v464_v33, %v321_v31  ;;  %v396_v36 = vadd.f32 %v395_v34, %v321_v31  ;;  %v466_v37 = vpop.f32.mrb[1].mxu1 }
 0x10f   : > { %vm611_vm1 = vcmp.gt.f32.partialorder %v394_v0, 0.0  ;;  %v619_v38 = vmul.f32 0.01, %v394_v0  ;;  %v467_v39 = vadd.f32 %v466_v37, %v321_v31 }
 0x110   : > { %vm613_vm2 = vcmp.gt.f32.partialorder %v465_v35, 0.0  ;;  %v621_v40 = vmul.f32 0.01, %v465_v35  ;;  %vm612_vm3 = vcmp.gt.f32.partialorder %v396_v36, 0.0  ;;  %v620_v41 = vmul.f32 0.01, %v396_v36 }
 0x111   : > { %v627_v42 = vsel %vm611_vm1, %v394_v0, %v619_v38  ;;  %vm614_vm4 = vcmp.gt.f32.partialorder %v467_v39, 0.0  ;;  %v622_v43 = vmul.f32 0.01, %v467_v39 }
 0x112   : > { %v629_v44 = vsel %vm613_vm2, %v465_v35, %v621_v40  ;;  %v628_v62 = vsel %vm612_vm3, %v396_v36, %v620_v41 }
 0x113   : > { %v635_v45 = vmax.f32 %v627_v42, %v629_v44  ;;  %v630_v46 = vsel %vm614_vm4, %v467_v39, %v622_v43 }
 0x114   : > { %v636_v47 = vmax.f32 %v628_v62, %v630_v46 }
 0x130   : > { %v535_v48 = vpop.f32.mrb[2].mxu0 }
 0x131   : > { %v536_v49 = vadd.f32 %v535_v48, %v321_v31  ;;  %v606_v50 = vpop.f32.mrb[2].mxu1  ;;  %v537_v51 = vpop.f32.mrb[3].mxu0 }
 0x132   : > { %v607_v52 = vadd.f32 %v606_v50, %v321_v31  ;;  %v538_v53 = vadd.f32 %v537_v51, %v321_v31  ;;  %v608_v54 = vpop.f32.mrb[3].mxu1 }
 0x133   : > { %vm615_vm5 = vcmp.gt.f32.partialorder %v536_v49, 0.0  ;;  %v623_v55 = vmul.f32 0.01, %v536_v49  ;;  %v609_v56 = vadd.f32 %v608_v54, %v321_v31 }
 0x134   : > { %vm617_vm6 = vcmp.gt.f32.partialorder %v607_v52, 0.0  ;;  %v625_v57 = vmul.f32 0.01, %v607_v52  ;;  %vm616_vm7 = vcmp.gt.f32.partialorder %v538_v53, 0.0  ;;  %v624_v58 = vmul.f32 0.01, %v538_v53 }
 0x135   : > { %v631_v59 = vsel %vm615_vm5, %v536_v49, %v623_v55  ;;  %vm618_vm8 = vcmp.gt.f32.partialorder %v609_v56, 0.0  ;;  %v626_v60 = vmul.f32 0.01, %v609_v56 }
 0x136   : > { %v633_v61 = vsel %vm617_vm6, %v607_v52, %v625_v57  ;;  %v632_v63 = vsel %vm616_vm7, %v538_v53, %v624_v58 }
 0x137   : > { %v637_v1 = vmax.f32 %v631_v59, %v633_v61  ;;  %v634_v2 = vsel %vm618_vm8, %v609_v56, %v626_v60 }
 0x138   : > { %v638_v3 = vmax.f32 %v632_v63, %v634_v2 }
 0x139   : > { %v639_v4 = vmax.f32 %v635_v45, %v637_v1 }
 0x13a   : > { %v640_v5 = vmax.f32 %v636_v47, %v638_v3 }
 0x13b   : > { %641 = vst [vmem:[%s170_s27] sm:$0xff] %v639_v4 }
 0x13c   : > { %642 = vst [vmem:[%s170_s27 + $0x8] sm:$0xff] %v640_v5 }
 0x13d PF: > { %s13_s12 = sadd.s32 1, %s874_s12  }
 0x13e   : > { %p10_p4 = scmp.ge.s32.totalorder %s13_s12, 4  }
 0x140   :  { %12 = sbr.rel (!%p10_p4) target bundleno = 1 (0x1), region = 62 }

// kernel: conv_class_forward.5
= control target key start
LH: loop header
LB: loop body
LE: loop exit
PB: predicated region body
PF: predicated region fallthrough
CT: control target
= control target key end

     0   :  { %10 = vsyncpa [#allocation3], 0  ;;  %s2031_s0 = inlined_call_operand.vmem [shape: f32[2,72,256], index: 0, kind: input, shape index: {}]   ;;  %s2032_s1 = inlined_call_operand.vmem [shape: f32[8,72], index: 1, kind: input, shape index: {}]   ;;  %s2033_s2 = inlined_call_operand.vmem [shape: f32[8,1], index: 2, kind: input, shape index: {}]   ;;  %s2034_s3 = inlined_call_operand.vmem [shape: f32[8,64,4], index: 3, kind: input, shape index: {}]   ;;  %s2035_s4 = inlined_call_operand.vmem [shape: f32[1,4], index: 4, kind: input, shape index: {}]   ;;  %s2036_s5 = inlined_call_operand.hbm [shape: f32[2,1,4], index: 5, kind: output, shape index: {}]  }
   0x1   :  { %12 = vsyncpa [#allocation3 + $0x1], 0  ;;  %s1643_s18 = smov 0   ;;  %s1645_s19 = smov 0  }
   0x2   :  { %s1647_s20 = smov 0   ;;  %s1649_s21 = smov 0  }
   0x3 LB: > { %s1664_s22 = sadd.s32 4294967295, %s1605_s21   ;;  %s1074_s23 = sadd.s32 4294967294, %s1605_s21   ;;  %s1605_s21 = sphi %s1649_s21, %s2042_s21   ;;  %s1601_s20 = sphi %s1647_s20, %s2041_s20   ;;  %s1597_s19 = sphi %s1645_s19, %s2040_s19   ;;  %s1593_s18 = sphi %s1643_s18, %s2039_s18  }
   0x4   : > { %s1668_s24 = sadd.s32 1, %s1605_s21   ;;  %s135_s25 = sadd.s32 1, %s1601_s20 }
   0x5   : > { %s132_s26 = ssub.s32 %s1605_s21, %s1668_s24  ;;  %p145_p0 = scmp.ne.s32.totalorder %s1601_s20, %s1597_s19 }
   0x6   : > { %p133_p1 = scmp.eq.s32.totalorder %s132_s26, 0  ;;  %p146_p2 = scmp.eq.s32.totalorder %s1664_s22, 1 }
   0x7   : > { %p151_p3 = scmp.ne.s32.totalorder %s1597_s19, %s1593_s18  ;;  %p152_p4 = scmp.eq.s32.totalorder %s1074_s23, 1 }
   0x8   : > { %s1679_s27 = scalar_select %p133_p1, %s1601_s20, %s135_s25  }
   0x9   : > { %p1681_p5 = por %p146_p2, %p145_p0  ;;  %p1685_p6 = por %p152_p4, %p151_p3 }
   0xa   : > { %p1077_p7 = scmp.ge.s32.totalorder %s1605_s21, 1  ;;  %p190_p8 = scmp.lt.s32.totalorder %s1605_s21, 3 }
   0xc   : > { %p191_p9 = pnand %p1077_p7, %p190_p8 }
   0xd   : > { %p217_p10 = scmp.lt.s32.totalorder (!%p191_p9), %s1664_s22, 1  ;;  %v241_v0 = vld [vmem:[%s2033_s2] sm:$0xff] (!%p191_p9)  ;;  %v1607_v1 = vmov (!%p191_p9), 0.0   ;;  %v1608_v2 = vmov (!%p191_p9), 0   ;;  %vm247_vm0 = vcmask (!%p191_p9), 588800   ;;  %v341_v31 = vld [vmem:[%s2034_s3 + $0x8] sm:$0xff] (!%p191_p9) }
   0xe   : > { %194 = sbr.rel (%p191_p9) target bundleno = 678 (0x2a6), region = 40  ;;  %315 = vmatprep.mubr.f32.mxu0 (!%p191_p9), %v1607_v1  ;;  %1542 = vset.pattern.permute.xlu0 (!%p191_p9), %v1608_v2  ;;  %v222_v29 = vld [vmem:[%s2032_s1] sm:$0xff] (!%p191_p9)  ;;  %v1609_v33 = vmov (!%p191_p9), 0.0|0.0   ;;  %v1100_v35 = vld [vmem:[%s2034_s3 + $0xc8] sm:$0xff] (!%p191_p9)  ;;  %v342_v36 = vld [vmem:[%s2034_s3 + $0x10] sm:$0xff] (!%p191_p9)  ;;  %vm1610_vm1 = vmmov (!%p191_p9), 0  }
   0xf   : > { %244 = vperm.xlu0 (!%p191_p9), %1542, %v241_v0   ;;  %v340_v30 = vld [vmem:[%s2034_s3] sm:$0xff] (!%p191_p9)  ;;  %1423 = vmatprep.subr.bf16.mxu1 (!%p191_p9), %v1609_v33  ;;  %v343_v37 = vld [vmem:[%s2034_s3 + $0x18] sm:$0xff] (!%p191_p9)  ;;  %v1101_v39 = vld [vmem:[%s2034_s3 + $0xd0] sm:$0xff] (!%p191_p9)  ;;  %s1611_s14 = smov (!%p191_p9), 64   ;;  %vm348_vm4 = vcmask (!%p191_p9), 523264   ;;  %s215_s15 = sand.u32 (!%p191_p9), 1, %s1597_s19  }
  0x10   : > { %v1099_v32 = vld [vmem:[%s2034_s3 + $0xc0] sm:$0xff] (!%p191_p9)  ;;  %v1388_v34 = vpack.c.bf16 (!%p191_p9), %v341_v31, %v340_v30  ;;  %v1102_v40 = vld [vmem:[%s2034_s3 + $0xd8] sm:$0xff] (!%p191_p9)  ;;  %v1391_v41 = vpack.c.bf16 (!%p191_p9), %v343_v37, %v342_v36  ;;  %v345_v44 = vld [vmem:[%s2034_s3 + $0x28] sm:$0xff] (!%p191_p9)  ;;  %1292 = vmatprep.mubr.msk.f32.mxu1 (!%p191_p9), %vm1610_vm1, %v1607_v1  ;;  %s1144_s23 = sshll.u32 (!%p191_p9), %s1664_s22, 4  ;;  %s216_s25 = scalar_lea.vmem (!%p191_p9), [#allocation2], %s215_s15  ;;  %vm1004_vm5 = vcmask (!%p191_p9), 24576  }
  0x11   : > { %v1424_v38 = vpack.c.bf16 (!%p191_p9), %v1100_v35, %v1099_v32  ;;  %v1427_v42 = vpack.c.bf16 (!%p191_p9), %v1102_v40, %v1101_v39  ;;  %v344_v43 = vld [vmem:[%s2034_s3 + $0x20] sm:$0xff] (!%p191_p9)  ;;  %v1104_v46 = vld [vmem:[%s2034_s3 + $0xe8] sm:$0xff] (!%p191_p9)  ;;  %v346_v49 = vld [vmem:[%s2034_s3 + $0x30] sm:$0xff] (!%p191_p9)  ;;  %s1019_s26 = sshll.u32 (!%p191_p9), %s216_s25, 4  ;;  %s1612_s9 = smov (!%p191_p9), [#allocation2]   ;;  %s1991_s26 = int_to_ptr.vmem [resolvable:$true] %s1019_s26 }
  0x12   : > { %v1103_v45 = vld [vmem:[%s2034_s3 + $0xe0] sm:$0xff] (!%p191_p9)  ;;  %v1394_v47 = vpack.c.bf16 (!%p191_p9), %v345_v44, %v344_v43  ;;  %v347_v50 = vld [vmem:[%s2034_s3 + $0x38] sm:$0xff] (!%p191_p9)  ;;  %v1105_v52 = vld [vmem:[%s2034_s3 + $0xf0] sm:$0xff] (!%p191_p9)  ;;  %s1547_s10 = sshll.u32 (!%p191_p9), %s1612_s9, 4  ;;  %s1548_s10 = int_to_ptr.vmem [resolvable:$false] %s1547_s10 }
  0x13   : > { %1425 = vmatpush3.bf16.msra.mxu1 (!%p191_p9), %v1424_v38  ;;  %v1430_v48 = vpack.c.bf16 (!%p191_p9), %v1104_v46, %v1103_v45  ;;  %v1397_v51 = vpack.c.bf16 (!%p191_p9), %v347_v50, %v346_v49  ;;  %v1106_v53 = vld [vmem:[%s2034_s3 + $0xf8] sm:$0xff] (!%p191_p9)  ;;  %v1081_v2 = vld [vmem:[%s2034_s3 + $0x40] sm:$0xff] (!%p191_p9)  ;;  %v1091_v31 = vld [vmem:[%s2034_s3 + $0x88] sm:$0xff] (!%p191_p9)  ;;  %p1550_p0 = scmp.lt.s32.totalorder (!%p191_p9), %s1991_s26, %s1548_s10 }
  0x14   : > { %1426 = vmatprep.subr.bf16.mxu1 (!%p191_p9), %v1609_v33  ;;  %v1433_v54 = vpack.c.bf16 (!%p191_p9), %v1106_v53, %v1105_v52  ;;  %v1090_v30 = vld [vmem:[%s2034_s3 + $0x80] sm:$0xff] (!%p191_p9)  ;;  %v1118_v35 = vld [vmem:[%s2034_s3 + $0x148] sm:$0xff] (!%p191_p9)  ;;  %v1092_v38 = vld [vmem:[%s2034_s3 + $0x90] sm:$0xff] (!%p191_p9) }
  0x15   : > { %s218_s7 = scalar_select %p217_p10, %s1664_s22, 1  ;;  %v1412_v36 = vpack.c.bf16 %v1091_v31, %v1090_v30  ;;  %v1093_v39 = vld [vmem:[%s2034_s3 + $0x98] sm:$0xff]  ;;  %v1094_v45 = vld [vmem:[%s2034_s3 + $0xa0] sm:$0xff]  ;;  %v1095_v46 = vld [vmem:[%s2034_s3 + $0xa8] sm:$0xff] }
  0x16   : > { %v1120_v43 = vld [vmem:[%s2034_s3 + $0x158] sm:$0xff]  ;;  %v1415_v44 = vpack.c.bf16 %v1093_v39, %v1092_v38  ;;  %v1122_v49 = vld [vmem:[%s2034_s3 + $0x168] sm:$0xff]  ;;  %v1418_v50 = vpack.c.bf16 %v1095_v46, %v1094_v45  ;;  %s1543_s22 = scalar_lea.vmem %s1991_s26, 16 }
  0x17   : > { %s1497_s8 = smul.u32 144, %s218_s7  ;;  %1428 = vmatpush3.bf16.msra.mxu1 %v1427_v42  ;;  %v1119_v42 = vld [vmem:[%s2034_s3 + $0x150] sm:$0xff]  ;;  %v1097_v52 = vld [vmem:[%s2034_s3 + $0xb8] sm:$0xff]  ;;  %s1989_s7 = scalar_lea.hbm %s2036_s5, %s1144_s23 }
  0x18   : > { %1429 = vmatprep.subr.bf16.mxu1 %v1609_v33  ;;  %p1544_p11 = scmp.ne.s32.totalorder %s1991_s26, %s1543_s22 }
  0x19   : > { %s1700_s11 = scalar_lea.vmem %s2031_s0, %s1497_s8  ;;  %s1007_s8 = scalar_lea.sflag [#allocation3], %s215_s15 }
  0x1a   : > { %v224_v3 = vld [vmem:[%s1700_s11 + $0x8] sm:$0xff]  ;;  %v226_v4 = vld [vmem:[%s1700_s11 + $0x18] sm:$0xff]  ;;  %v223_v5 = vld [vmem:[%s1700_s11] sm:$0xff]  ;;  %p1545_p12 = pnand %p1544_p11, %p1681_p5 }
  0x1b   : > { %v1371_v6 = vpack.c.bf16 %v226_v4, %v224_v3  ;;  %v225_v7 = vld [vmem:[%s1700_s11 + $0x10] sm:$0xff]  ;;  %v228_v8 = vld [vmem:[%s1700_s11 + $0x28] sm:$0xff]  ;;  %v230_v9 = vld [vmem:[%s1700_s11 + $0x38] sm:$0xff]  ;;  %1431 = vmatpush3.bf16.msra.mxu1 %v1430_v48 }
  0x1c   : > { %v1373_v10 = vpack.c.bf16 %v225_v7, %v223_v5  ;;  %v1375_v11 = vpack.c.bf16 %v230_v9, %v228_v8  ;;  %v227_v12 = vld [vmem:[%s1700_s11 + $0x20] sm:$0xff]  ;;  %v229_v13 = vld [vmem:[%s1700_s11 + $0x30] sm:$0xff]  ;;  %v232_v14 = vld [vmem:[%s1700_s11 + $0x48] sm:$0xff]  ;;  %1432 = vmatprep.subr.bf16.mxu1 %v1609_v33  ;;  %p1546_p13 = pneg %p1545_p12 }
  0x1d   : > { %1372 = vmatprep.subr.bf16.mxu0 %v1371_v6  ;;  %v234_v15 = vld [vmem:[%s1700_s11 + $0x58] sm:$0xff]  ;;  %v1377_v16 = vpack.c.bf16 %v229_v13, %v227_v12  ;;  %v231_v18 = vld [vmem:[%s1700_s11 + $0x40] sm:$0xff]  ;;  %v233_v19 = vld [vmem:[%s1700_s11 + $0x50] sm:$0xff] }
  0x1e   : > { %1374 = vmatpush1.bf16.msra.mxu0 %v1373_v10  ;;  %v1379_v17 = vpack.c.bf16 %v234_v15, %v232_v14  ;;  %v236_v20 = vld [vmem:[%s1700_s11 + $0x68] sm:$0xff]  ;;  %v238_v21 = vld [vmem:[%s1700_s11 + $0x78] sm:$0xff]  ;;  %v1381_v22 = vpack.c.bf16 %v233_v19, %v231_v18  ;;  %v235_v24 = vld [vmem:[%s1700_s11 + $0x60] sm:$0xff] }
  0x1f   : > { %1376 = vmatprep.subr.bf16.mxu0 %v1375_v11  ;;  %v1383_v23 = vpack.c.bf16 %v238_v21, %v236_v20  ;;  %v237_v25 = vld [vmem:[%s1700_s11 + $0x70] sm:$0xff]  ;;  %v240_v27 = vld [vmem:[%s1700_s11 + $0x88] sm:$0xff]  ;;  %v239_v28 = vld [vmem:[%s1700_s11 + $0x80] sm:$0xff]  ;;  %1434 = vmatpush3.bf16.msra.mxu1 %v1433_v54  ;;  %s1549_s11 = scalar_lea.vmem %s1548_s10, 32 }
  0x20   : > { %v1385_v26 = vpack.c.bf16 %v237_v25, %v235_v24  ;;  %1435 = vmatprep.subr.bf16.mxu1 %v1609_v33  ;;  %v1082_v3 = vld [vmem:[%s2034_s3 + $0x48] sm:$0xff]  ;;  %v1108_v7 = vld [vmem:[%s2034_s3 + $0x100] sm:$0xff]  ;;  %v1083_v11 = vld [vmem:[%s2034_s3 + $0x50] sm:$0xff]  ;;  %p1551_p1 = scmp.lt.s32.totalorder %s1549_s11, %s1543_s22 }
  0x21   : > { %v1109_v8 = vld [vmem:[%s2034_s3 + $0x108] sm:$0xff]  ;;  %v1400_v9 = vpack.c.bf16 %v1082_v3, %v1081_v2  ;;  %v1084_v12 = vld [vmem:[%s2034_s3 + $0x58] sm:$0xff]  ;;  %v1110_v15 = vld [vmem:[%s2034_s3 + $0x110] sm:$0xff] }
  0x22   : > { %1378 = vmatpush1.bf16.msra.mxu0 %v1377_v16  ;;  %v1436_v13 = vpack.c.bf16 %v1109_v8, %v1108_v7  ;;  %v1111_v16 = vld [vmem:[%s2034_s3 + $0x118] sm:$0xff]  ;;  %v1085_v18 = vld [vmem:[%s2034_s3 + $0x60] sm:$0xff]  ;;  %v1086_v19 = vld [vmem:[%s2034_s3 + $0x68] sm:$0xff]  ;;  %p1552_p2 = por %p1551_p1, %p1550_p0 }
  0x23   : > { %1380 = vmatprep.subr.bf16.mxu0 %v1379_v17  ;;  %v1403_v17 = vpack.c.bf16 %v1084_v12, %v1083_v11  ;;  %v1439_v20 = vpack.c.bf16 %v1111_v16, %v1110_v15  ;;  %v1112_v21 = vld [vmem:[%s2034_s3 + $0x120] sm:$0xff]  ;;  %v1087_v24 = vld [vmem:[%s2034_s3 + $0x70] sm:$0xff]  ;;  %v1088_v25 = vld [vmem:[%s2034_s3 + $0x78] sm:$0xff] }
  0x24   : > { %v1121_v48 = vld [vmem:[%s2034_s3 + $0x160] sm:$0xff]  ;;  %v1123_v54 = vld [vmem:[%s2034_s3 + $0x170] sm:$0xff]  ;;  %v1133_v7 = vld [vmem:[%s2034_s3 + $0x1b8] sm:$0xff]  ;;  %p1553_p3 = pnand %p1552_p2, %p1546_p13 }
  0x25   : > { %v1454_v53 = vpack.c.bf16 %v1122_v49, %v1121_v48  ;;  %v1130_v3 = vld [vmem:[%s2034_s3 + $0x1a0] sm:$0xff]  ;;  %v1136_v11 = vld [vmem:[%s2034_s3 + $0x1c8] sm:$0xff]  ;;  %v1138_v15 = vld [vmem:[%s2034_s3 + $0x1d8] sm:$0xff] }
  0x26   : > { %1382 = vmatpush1.bf16.msra.mxu0 %v1381_v22  ;;  %v1113_v22 = vld [vmem:[%s2034_s3 + $0x128] sm:$0xff] }
  0x27   : > { %1384 = vmatprep.subr.bf16.mxu0 %v1383_v23  ;;  %v1406_v23 = vpack.c.bf16 %v1086_v19, %v1085_v18  ;;  %v1140_v18 = vld [vmem:[%s2034_s3 + $0x1e8] sm:$0xff] }
  0x2a   : > { %1386 = vmatpush1.bf16.msra.mxu0 %v1385_v26  ;;  %v1442_v26 = vpack.c.bf16 %v1113_v22, %v1112_v21 }
  0x2b   : > { %267 = vmatprep.subr.mxu0 %v240_v27  ;;  %v1114_v27 = vld [vmem:[%s2034_s3 + $0x130] sm:$0xff] }
  0x2e   : > { %268 = vmatpush1.msra.mxu0 %v239_v28  ;;  %v1115_v28 = vld [vmem:[%s2034_s3 + $0x138] sm:$0xff] }
  0x2f   : > { %1079 = vmatmul.mubr.msk.f32.vlgmr.msra.gmra.mrb[0].mxu0 %vm247_vm0, %v222_v29  ;;  %1387 = vmatprep.subr.bf16.mxu0 %v1609_v33  ;;  %v1409_v29 = vpack.c.bf16 %v1088_v25, %v1087_v24  ;;  %v1445_v32 = vpack.c.bf16 %v1115_v28, %v1114_v27  ;;  %v339_v25 = vld [vmem:[%s2035_s4] sm:$0x1] }
  0x30   : > { %1389 = vmatpush3.bf16.msra.mxu0 %v1388_v34  ;;  %1235 = vmatprep.mubr.msk.f32.mxu0 %vm1610_vm1, %v1607_v1  ;;  %v1117_v34 = vld [vmem:[%s2034_s3 + $0x140] sm:$0xff] }
  0x31   : > { %1390 = vmatprep.subr.bf16.mxu0 %v1609_v33  ;;  %v1448_v40 = vpack.c.bf16 %v1118_v35, %v1117_v34 }
  0x34   : > { %1392 = vmatpush3.bf16.msra.mxu0 %v1391_v41 }
  0x35   : > { %1393 = vmatprep.subr.bf16.mxu0 %v1609_v33 }
  0x38   : > { %1395 = vmatpush3.bf16.msra.mxu0 %v1394_v47  ;;  %v1451_v47 = vpack.c.bf16 %v1120_v43, %v1119_v42 }
  0x39   : > { %1396 = vmatprep.subr.bf16.mxu0 %v1609_v33 }
  0x3c   : > { %1398 = vmatpush3.bf16.msra.mxu0 %v1397_v51  ;;  %v1096_v51 = vld [vmem:[%s2034_s3 + $0xb0] sm:$0xff] }
  0x3d   : > { %1399 = vmatprep.subr.bf16.mxu0 %v1609_v33 }
  0x8e   : > { %v245_v55 = vpop.permute.xlu0 %244 }
 0x102   : > { %v317_v56 = vpop.f32.mrb[0].mxu0 }
 0x103   : > { %v318_v57 = vadd.f32 %v317_v56, %v245_v55  ;;  %v319_v58 = vpop.f32.mrb[1].mxu0  ;;  %v1421_v56 = vpack.c.bf16 %v1097_v52, %v1096_v51 }
 0x104   : > { %v320_v59 = vadd.f32 %v319_v58, %v245_v55  ;;  %v1124_v55 = vld [vmem:[%s2034_s3 + $0x178] sm:$0xff]  ;;  %v1126_v58 = vld [vmem:[%s2034_s3 + $0x180] sm:$0xff] }
 0x105   : > { %v324_v60 = vmul.f32 0.01, %v318_v57  ;;  %vm322_vm2 = vcmp.gt.f32.partialorder %v318_v57, 0.0 }
 0x106   : > { %vm323_vm3 = vcmp.gt.f32.partialorder %v320_v59, 0.0  ;;  %v325_v61 = vmul.f32 0.01, %v320_v59 }
 0x107   : > { %v326_v62 = vsel %vm322_vm2, %v318_v57, %v324_v60  ;;  %v1457_v57 = vpack.c.bf16 %v1124_v55, %v1123_v54 }
 0x108   : > { %329 = vrot.lane.b32.xlu0 %v326_v62, %s1611_s14  ;;  %v327_v63 = vsel %vm323_vm3, %v320_v59, %v325_v61  ;;  %v1127_v59 = vld [vmem:[%s2034_s3 + $0x188] sm:$0xff] }
 0x109   : > { %334 = vrot.lane.b32.xlu1 %v327_v63, %s1611_s14  ;;  %v1460_v61 = vpack.c.bf16 %v1127_v59, %v1126_v58 }
 0x17a   : > { %v330_v0 = vpop.permute.xlu0 %329 }
 0x17b   : > { %v332_v4 = vmax.f32 %v326_v62, %v330_v0  ;;  %v335_v5 = vpop.permute.xlu1 %334  ;;  %v1129_v0 = vld [vmem:[%s2034_s3 + $0x198] sm:$0xff] }
 0x17c   : > { %v337_v6 = vmax.f32 %v327_v63, %v335_v5  ;;  %v1128_v63 = vld [vmem:[%s2034_s3 + $0x190] sm:$0xff] }
 0x17d   : > { %v1463_v2 = vpack.c.bf16 %v1129_v0, %v1128_v63 }
 0x17e   : > { %v1797_v10 = vmax.f32 %v332_v4, %v337_v6  ;;  %v1131_v4 = vld [vmem:[%s2034_s3 + $0x1a8] sm:$0xff]  ;;  %v1132_v6 = vld [vmem:[%s2034_s3 + $0x1b0] sm:$0xff] }
 0x17f   : > { %v1466_v5 = vpack.c.bf16 %v1131_v4, %v1130_v3  ;;  %v1469_v8 = vpack.c.bf16 %v1133_v7, %v1132_v6 }
 0x180   : > { %1236 = vmatmul.mubr.msk.f32.vlgmr.msra.gmra.mrb[2].mxu0 %vm348_vm4, %v1797_v10  ;;  %v598_v14 = vrot.slane %v1797_v10, 3  ;;  %v432_v37 = vrot.slane %v1797_v10, 1  ;;  %v681_v41 = vrot.slane %v1797_v10, 4  ;;  %v515_v60 = vrot.slane %v1797_v10, 2 }
 0x181   : > { %1401 = vmatpush3.bf16.msra.mxu0 %v1400_v9  ;;  %1254 = vmatprep.mubr.msk.f32.mxu0 %vm1610_vm1, %v1607_v1  ;;  %v764_v62 = vrot.slane %v1797_v10, 5  ;;  %v1135_v9 = vld [vmem:[%s2034_s3 + $0x1c0] sm:$0xff]  ;;  %v930_v22 = vrot.slane %v1797_v10, 7 }
 0x182   : > { %1293 = vmatmul.mubr.msk.f32.vlgmr.msra.gmra.mrb[0].mxu1 %vm348_vm4, %v598_v14  ;;  %1402 = vmatprep.subr.bf16.mxu0 %v1609_v33  ;;  %v1472_v12 = vpack.c.bf16 %v1136_v11, %v1135_v9  ;;  %v1137_v14 = vld [vmem:[%s2034_s3 + $0x1d0] sm:$0xff] }
 0x183   : > { %1437 = vmatpush3.bf16.msra.mxu1 %v1436_v13  ;;  %1311 = vmatprep.mubr.msk.f32.mxu1 %vm1610_vm1, %v1607_v1  ;;  %v847_v13 = vrot.slane %v1797_v10, 6  ;;  %v1475_v16 = vpack.c.bf16 %v1138_v15, %v1137_v14 }
 0x184   : > { %1438 = vmatprep.subr.bf16.mxu1 %v1609_v33 }
 0x185   : > { %1404 = vmatpush3.bf16.msra.mxu0 %v1403_v17  ;;  %v1139_v17 = vld [vmem:[%s2034_s3 + $0x1e0] sm:$0xff] }
 0x186   : > { %1405 = vmatprep.subr.bf16.mxu0 %v1609_v33  ;;  %v1478_v19 = vpack.c.bf16 %v1140_v18, %v1139_v17 }
 0x187   : > { %1440 = vmatpush3.bf16.msra.mxu1 %v1439_v20  ;;  %v1142_v20 = vld [vmem:[%s2034_s3 + $0x1f8] sm:$0xff] }
 0x188   : > { %1441 = vmatprep.subr.bf16.mxu1 %v1609_v33 }
 0x189   : > { %1407 = vmatpush3.bf16.msra.mxu0 %v1406_v23 }
 0x18a   : > { %1408 = vmatprep.subr.bf16.mxu0 %v1609_v33 }
 0x18b   : > { %1443 = vmatpush3.bf16.msra.mxu1 %v1442_v26 }
 0x18c   : > { %1444 = vmatprep.subr.bf16.mxu1 %v1609_v33 }
 0x18d   : > { %1410 = vmatpush3.bf16.msra.mxu0 %v1409_v29 }
 0x18e   : > { %1411 = vmatprep.subr.bf16.mxu0 %v1609_v33 }
 0x18f   : > { %1446 = vmatpush3.bf16.msra.mxu1 %v1445_v32 }
 0x190   : > { %1255 = vmatmul.mubr.msk.f32.vlgmr.msra.gmra.mrb[2].mxu0 %vm348_vm4, %v432_v37  ;;  %1447 = vmatprep.subr.bf16.mxu1 %v1609_v33 }
 0x191   : > { %1413 = vmatpush3.bf16.msra.mxu0 %v1412_v36  ;;  %1273 = vmatprep.mubr.msk.f32.mxu0 %vm1610_vm1, %v1607_v1 }
 0x192   : > { %1312 = vmatmul.mubr.msk.f32.vlgmr.msra.gmra.mrb[0].mxu1 %vm348_vm4, %v681_v41  ;;  %1414 = vmatprep.subr.bf16.mxu0 %v1609_v33 }
 0x193   : > { %1449 = vmatpush3.bf16.msra.mxu1 %v1448_v40  ;;  %1330 = vmatprep.mubr.msk.f32.mxu1 %vm1610_vm1, %v1607_v1 }
 0x194   : > { %1450 = vmatprep.subr.bf16.mxu1 %v1609_v33 }
 0x195   : > { %1416 = vmatpush3.bf16.msra.mxu0 %v1415_v44 }
 0x196   : > { %1417 = vmatprep.subr.bf16.mxu0 %v1609_v33 }
 0x197   : > { %1452 = vmatpush3.bf16.msra.mxu1 %v1451_v47 }
 0x198   : > { %1453 = vmatprep.subr.bf16.mxu1 %v1609_v33 }
 0x199   : > { %1419 = vmatpush3.bf16.msra.mxu0 %v1418_v50 }
 0x19a   : > { %1420 = vmatprep.subr.bf16.mxu0 %v1609_v33 }
 0x19b   : > { %1455 = vmatpush3.bf16.msra.mxu1 %v1454_v53 }
 0x19c   : > { %1456 = vmatprep.subr.bf16.mxu1 %v1609_v33 }
 0x19d   : > { %1422 = vmatpush3.bf16.msra.mxu0 %v1421_v56 }
 0x19f   : > { %1458 = vmatpush3.bf16.msra.mxu1 %v1457_v57 }
 0x1a0   : > { %1274 = vmatmul.mubr.msk.f32.vlgmr.msra.gmra.mrb[2].mxu0 %vm348_vm4, %v515_v60  ;;  %1459 = vmatprep.subr.bf16.mxu1 %v1609_v33 }
 0x1a2   : > { %1331 = vmatmul.mubr.msk.f32.vlgmr.msra.gmra.mrb[0].mxu1 %vm348_vm4, %v764_v62 }
 0x1a3   : > { %1461 = vmatpush3.bf16.msra.mxu1 %v1460_v61  ;;  %1349 = vmatprep.mubr.msk.f32.mxu1 %vm1610_vm1, %v1607_v1 }
 0x1a4   : > { %1462 = vmatprep.subr.bf16.mxu1 %v1609_v33 }
 0x1a7   : > { %1464 = vmatpush3.bf16.msra.mxu1 %v1463_v2 }
 0x1a8   : > { %1465 = vmatprep.subr.bf16.mxu1 %v1609_v33 }
 0x1ab   : > { %1467 = vmatpush3.bf16.msra.mxu1 %v1466_v5 }
 0x1ac   : > { %1468 = vmatprep.subr.bf16.mxu1 %v1609_v33 }
 0x1af   : > { %1470 = vmatpush3.bf16.msra.mxu1 %v1469_v8 }
 0x1b0   : > { %1471 = vmatprep.subr.bf16.mxu1 %v1609_v33 }
 0x1b2   : > { %1350 = vmatmul.mubr.msk.f32.vlgmr.msra.gmra.mrb[0].mxu1 %vm348_vm4, %v847_v13 }
 0x1b3   : > { %1473 = vmatpush3.bf16.msra.mxu1 %v1472_v12  ;;  %1368 = vmatprep.mubr.msk.f32.mxu1 %vm1610_vm1, %v1607_v1  ;;  %v1141_v1 = vld [vmem:[%s2034_s3 + $0x1f0] sm:$0xff] }
 0x1b4   : > { %1474 = vmatprep.subr.bf16.mxu1 %v1609_v33  ;;  %v1481_v21 = vpack.c.bf16 %v1142_v20, %v1141_v1 }
 0x1b7   : > { %1476 = vmatpush3.bf16.msra.mxu1 %v1475_v16 }
 0x1b8   : > { %1477 = vmatprep.subr.bf16.mxu1 %v1609_v33 }
 0x1bb   : > { %1479 = vmatpush3.bf16.msra.mxu1 %v1478_v19 }
 0x1bc   : > { %1480 = vmatprep.subr.bf16.mxu1 %v1609_v33 }
 0x1bf   : > { %1482 = vmatpush3.bf16.msra.mxu1 %v1481_v21 }
 0x1c2   : > { %1369 = vmatmul.mubr.msk.f32.vlgmr.msra.gmra.mrb[0].mxu1 %vm348_vm4, %v930_v22 }
 0x273   : > { %v584_v23 = vpop.f32.mrb[2].mxu0 }
 0x274   : > { %v1275_v24 = vpop.f32.mrb[3].mxu0  ;;  %v1483_v26 = vadd.f32 %v584_v23, %v339_v25 }
 0x295   : > { %v999_v27 = vpop.f32.mrb[0].mxu1 }
 0x296   : > { %v1484_v33 = vadd.f32 %v1483_v26, %v999_v27  ;;  %v1370_v28 = vpop.f32.mrb[1].mxu1 }
 0x298   : > { %1005 = vst.msk [vmem:[%s216_s25] sm:$0x1] %vm1004_vm5, %v1484_v33 }
 0x299   : > { %1556 = shalt.err (!%p1553_p3)
}
 0x29a   : > { %s1557_s12 = scalar_lea.hbm %s1989_s7, 16  ;;  %s1561_s15 = scalar_lea.hbm %s2036_s5, 32 }
 0x29b   : > { %p1558_p4 = scmp.ne.s32.totalorder %s1989_s7, %s1557_s12  ;;  %p1562_p9 = scmp.lt.u32.totalorder %s1989_s7, %s2036_s5 }
 0x29c   : > { %p1563_p10 = scmp.lt.u32.totalorder %s1561_s15, %s1557_s12  ;;  %p1565_p12 = scmp.lt.u32.totalorder %s1557_s12, %s1989_s7 }
 0x29d   : > { %p1559_p7 = pnand %p1558_p4, %p1681_p5 }
 0x29e   : > { %p1564_p11 = por %p1563_p10, %p1562_p9 }
 0x29f   : > { %p1560_p8 = pneg %p1559_p7 }
 0x2a0   : > { %p1566_p13 = por %p1565_p12, %p1564_p11 }
 0x2a2   : > { %p1567_p0 = pnand %p1566_p13, %p1560_p8 }
 0x2a4   : > { %1570 = shalt.err (!%p1567_p0)
}
 0x2a5   : > { %1498 = dma.vmem_to_hbm [thread:$0]  (%p1681_p5), %s1991_s26, 16, %s1989_s7, %s1007_s8  }
 0x2a6 PF: > { %p1504_p1 = scmp.ge.s32.totalorder %s1605_s21, 2  ;;  %s1031_s23 = sand.u32 1, %s1593_s18  }
 0x2a7   : > { %s1032_s25 = scalar_lea.sflag [#allocation3], %s1031_s23 }
 0x2a8   : > { %p1501_p2 = pnand %p1504_p1, %p1685_p6 }
 0x2aa   : > { %1588 = dma.done.wait (!%p1501_p2), %s1032_s25, 16  }
 0x2ab   : > { %1590 = vsyncadd (!%p1501_p2), %s1032_s25, 4294967280  ;;  %p15_p3 = scmp.ge.s32.totalorder %s1668_s24, 4   ;;  %s2039_s18 = smov %s1597_s19 }
 0x2ac   : > { %s2040_s19 = smov %s1601_s20  ;;  %s2041_s20 = smov %s1679_s27 }
 0x2ad   : > { %s2042_s21 = smov %s1668_s24  ;;  %17 = sbr.rel (!%p15_p3) target bundleno = 3 (0x3), region = 82 }
 0x2b4   :  { %1036 = vsyncpa [#allocation3], 1 }
 0x2b5   :  { %1038 = vsyncpa [#allocation3 + $0x1], 1 }

</bundles_post_ra>
